<compile_context>
chip_gen: v6e
topology: v6e:2x2x1
jax: 0.10.0
libtpu: 0.0.40
codegen_flags: <defaults>
</compile_context>

<pallas_src>
import functools

import jax
import jax.numpy as jnp
from jax import lax
from jax.experimental import pallas as pl
from jax.experimental.pallas import tpu as pltpu


def _bigru_kernel(H, G, T,
                  x_f_ref, x_b_ref,            # (T, B, 1) fwd-time / reversed-time input
                  wf_ref, wb_ref, bih_ref,     # (1, 3G) input-proj rows + input bias
                  whh_ref, bhh_ref,            # (G, 3G) block-diag recurrent W, (1, 3G) bias
                  w1_ref, b1_ref, w2_ref, b2_ref,
                  ht_ref, logp_ref,            # (T, B, G) fused per-step states, (B, L)
                  gi_scr):                     # VMEM scratch (T, B, 3G)
    B = x_f_ref.shape[1]

    whh = whh_ref[...]
    bhh = bhh_ref[...]

    # ---- input projection for BOTH directions and ALL timesteps, hoisted off
    # the serial chain.  gi[t] = [r_f r_b | z_f z_b | n_f n_b] (each gate slab
    # padded to G = 128 lanes).
    gi_all = (x_f_ref[...] * wf_ref[...]
              + x_b_ref[...] * wb_ref[...]
              + bih_ref[...])                                   # (T, B, 3G)
    gi_scr[...] = gi_all

    def gru_step(gi, h):
        # h: (B, G) fused [fwd | bwd | 0-pad] state.  One matmul per step.
        gh = jnp.dot(h, whh, preferred_element_type=jnp.float32) + bhh  # (B, 3G)
        r = jax.nn.sigmoid(gi[:, 0:G] + gh[:, 0:G])
        z = jax.nn.sigmoid(gi[:, G:2 * G] + gh[:, G:2 * G])
        n = jnp.tanh(gi[:, 2 * G:3 * G] + r * gh[:, 2 * G:3 * G])
        # padding lanes: gi=gh=0 -> n=0, z=0.5 -> h stays exactly 0 forever.
        return (1.0 - z) * n + z * h

    h0 = jnp.zeros((B, G), jnp.float32)

    # Peel step 0: its backward lanes are the backward state at original time
    # T-1, which the FC head needs (matches torch's ht[:, -1, 1, :]).
    h1 = gru_step(gi_scr[0], h0)
    ht_ref[0] = h1

    def body(t, h):
        h_new = gru_step(gi_scr[t], h)
        ht_ref[t] = h_new
        return h_new

    h_last = lax.fori_loop(1, T, body, h1, unroll=True)

    # ---- FC head.  X = cat(fwd state @ t=T-1, bwd state @ t=T-1).
    # Build it lane-aligned as [h_last | h1] (B, 2G); w1_pad has zero rows for
    # the lanes of Xp that are not part of X, so no sub-vreg slicing is needed.
    Xp = jnp.concatenate([h_last, h1], axis=1)                  # (B, 2G)
    h_fc1 = jnp.maximum(
        jnp.dot(Xp, w1_ref[...], preferred_element_type=jnp.float32) + b1_ref[...],
        0.0)                                                    # (B, H)
    # nn.Dropout(0.2) is identity at inference time.
    logits = jnp.maximum(
        jnp.dot(h_fc1, w2_ref[...], preferred_element_type=jnp.float32) + b2_ref[...],
        0.0)                                                    # (B, L)

    # LogSoftmax(dim=1)
    m = jnp.max(logits, axis=1, keepdims=True)
    s = logits - m
    logp_ref[...] = s - jnp.log(jnp.sum(jnp.exp(s), axis=1, keepdims=True))


def _pack_params(p, H, G):
    """Build the fused, 128-lane-padded weights the kernel consumes."""
    def pad_gate_row(w, offset):
        # w: (1, 3H), gate order [r, z, n].  Place each H-wide block at column
        # g*G + offset of a (1, 3G) zero slab.
        out = jnp.zeros((1, 3 * G), jnp.float32)
        for g in range(3):
            out = out.at[:, g * G + offset:g * G + offset + H].set(
                w[:, g * H:(g + 1) * H])
        return out

    wf_row = pad_gate_row(p["wih_f"], 0)
    wb_row = pad_gate_row(p["wih_b"], H)
    bih_cat = pad_gate_row(p["bih_f"], 0) + pad_gate_row(p["bih_b"], H)
    bhh_cat = pad_gate_row(p["bhh_f"], 0) + pad_gate_row(p["bhh_b"], H)

    # Block-diagonal recurrent weight: rows [0:H] = fwd hidden, rows [H:2H] =
    # bwd hidden, columns = [r_f r_b pad | z_f z_b pad | n_f n_b pad].
    whh_pad = jnp.zeros((G, 3 * G), jnp.float32)
    for g in range(3):
        whh_pad = whh_pad.at[0:H, g * G:g * G + H].set(
            p["whh_f"][:, g * H:(g + 1) * H])
        whh_pad = whh_pad.at[H:2 * H, g * G + H:g * G + 2 * H].set(
            p["whh_b"][:, g * H:(g + 1) * H])

    # fc1 weight lifted onto the padded concat [h_last | h1] (2G rows): the
    # fwd part of X lives in rows [0:H], the bwd part in rows [G+H : G+2H].
    w1_pad = jnp.zeros((2 * G, H), jnp.float32)
    w1_pad = w1_pad.at[0:H, :].set(p["w1"][0:H, :])
    w1_pad = w1_pad.at[G + H:G + 2 * H, :].set(p["w1"][H:2 * H, :])
    return wf_row, wb_row, bih_cat, bhh_cat, whh_pad, w1_pad


def analysis_bigru_forward(x, params):
    """x: (B, T) float32.  Returns (logp (B,L), ht (B,T,2,H), hidden (2,B,H))."""
    B, T = x.shape
    H = params["whh_f"].shape[0]
    L = params["b2"].shape[-1]
    G = ((2 * H + 127) // 128) * 128          # padded fused gate / hidden width

    x_tm = jnp.transpose(x)                   # (T, B) time-major
    x_f = x_tm[:, :, None]                    # (T, B, 1) forward-time input
    x_b = x_tm[::-1, :, None]                 # (T, B, 1) reversed-time input

    wf_row, wb_row, bih_cat, bhh_cat, whh_pad, w1_pad = _pack_params(params, H, G)

    kernel = functools.partial(_bigru_kernel, H, G, T)
    vmem = pl.BlockSpec(memory_space=pltpu.MemorySpace.VMEM)
    inputs = (x_f, x_b, wf_row, wb_row, bih_cat, whh_pad, bhh_cat,
              w1_pad, params["b1"], params["w2"], params["b2"])

    flops = (2 * T * B * G * 3 * G            # recurrent matmuls
             + 2 * B * 2 * G * H + 2 * B * H * L   # FC head
             + 6 * T * B * G)                 # gate elementwise
    transcendentals = 3 * T * B * G + 2 * B * L
    bytes_accessed = 4 * (2 * T * B + 5 * 3 * G + G * 3 * G + 2 * G * H
                          + H + H * L + L + T * B * G + B * L)
    cost = pl.CostEstimate(flops=flops, transcendentals=transcendentals,
                           bytes_accessed=bytes_accessed)

    ht_pad, logp = pl.pallas_call(
        kernel,
        out_shape=(
            jax.ShapeDtypeStruct((T, B, G), jnp.float32),   # fused per-step states
            jax.ShapeDtypeStruct((B, L), jnp.float32),      # log-probs
        ),
        in_specs=[vmem] * len(inputs),
        out_specs=(vmem, vmem),
        scratch_shapes=[pltpu.VMEM((T, B, 3 * G), jnp.float32)],
        cost_estimate=cost,
    )(*inputs)

    # Layout plumbing back to PyTorch shapes (fused step t holds the forward
    # state for time t and the backward state for time T-1-t).
    hf = jnp.transpose(ht_pad[:, :, 0:H], (1, 0, 2))           # (B, T, H)
    hb = jnp.transpose(ht_pad[::-1, :, H:2 * H], (1, 0, 2))    # (B, T, H)
    ht = jnp.stack([hf, hb], axis=2)                           # (B, T, 2, H)
    hidden = jnp.stack([ht_pad[T - 1, :, 0:H],
                        ht_pad[T - 1, :, H:2 * H]], axis=0)    # (2, B, H)
    return logp, ht, hidden


def init_params(key, H, L):
    """Deterministic synthetic weights with PyTorch-style shapes (pre-transposed)."""
    ks = jax.random.split(key, 13)
    kg = 1.0 / jnp.sqrt(jnp.float32(H))
    k1 = 1.0 / jnp.sqrt(jnp.float32(2 * H))

    def u(kk, shape, bound):
        return jax.random.uniform(kk, shape, jnp.float32, -bound, bound)

    return dict(
        # GRU forward direction: weight_ih (3H,1) -> (1,3H); weight_hh (3H,H) -> (H,3H)
        wih_f=u(ks[0], (1, 3 * H), kg), whh_f=u(ks[1], (H, 3 * H), kg),
        bih_f=u(ks[2], (1, 3 * H), kg), bhh_f=u(ks[3], (1, 3 * H), kg),
        # GRU backward direction
        wih_b=u(ks[4], (1, 3 * H), kg), whh_b=u(ks[5], (H, 3 * H), kg),
        bih_b=u(ks[6], (1, 3 * H), kg), bhh_b=u(ks[7], (1, 3 * H), kg),
        # fc1: (H, 2H) -> transposed (2H, H)
        w1=u(ks[8], (2 * H, H), k1), b1=u(ks[9], (1, H), k1),
        # fc2: (L, H) -> transposed (H, L)
        w2=u(ks[10], (H, L), kg), b2=u(ks[11], (1, L), kg),
    )


def reference_forward(x, p):
    """Pure-JAX reference mirroring the PyTorch forward (eval-mode dropout)."""
    B, T = x.shape
    H = p["whh_f"].shape[0]

    def cell(h, x_t, wih, whh, bih, bhh):
        gi = x_t[:, None] * wih + bih
        gh = h @ whh + bhh
        r = jax.nn.sigmoid(gi[:, :H] + gh[:, :H])
        z = jax.nn.sigmoid(gi[:, H:2 * H] + gh[:, H:2 * H])
        n = jnp.tanh(gi[:, 2 * H:] + r * gh[:, 2 * H:])
        return (1.0 - z) * n + z * h

    h = jnp.zeros((B, H), jnp.float32)
    hf = []
    for t in range(T):
        h = cell(h, x[:, t], p["wih_f"], p["whh_f"], p["bih_f"], p["bhh_f"])
        hf.append(h)
    hb = [None] * T
    h = jnp.zeros((B, H), jnp.float32)
    for t in range(T - 1, -1, -1):
        h = cell(h, x[:, t], p["wih_b"], p["whh_b"], p["bih_b"], p["bhh_b"])
        hb[t] = h
    ht = jnp.stack([jnp.stack(hf, axis=1), jnp.stack(hb, axis=1)], axis=2)  # (B,T,2,H)
    hidden = jnp.stack([hf[-1], hb[0]], axis=0)                              # (2,B,H)
    X = jnp.concatenate([ht[:, -1, 0, :], ht[:, -1, 1, :]], axis=1)
    h1 = jnp.maximum(X @ p["w1"] + p["b1"], 0.0)
    logits = jnp.maximum(h1 @ p["w2"] + p["b2"], 0.0)
    return jax.nn.log_softmax(logits, axis=1), ht, hidden


if __name__ == "__main__":
    B, T, H = 2, 8, 32
    labels = ["a", "b", "c", "d"]
    L = len(labels)

    key = jax.random.PRNGKey(0)
    kx, kp = jax.random.split(key)
    x = jax.random.normal(kx, (B, T), jnp.float32)
    params = init_params(kp, H, L)

    fwd = jax.jit(analysis_bigru_forward)
    logp, ht, hidden = fwd(x, params)
    jax.block_until_ready((logp, ht, hidden))

    logp_r, ht_r, hidden_r = reference_forward(x, params)
    assert logp.shape == (B, L) and ht.shape == (B, T, 2, H) and hidden.shape == (2, B, H)
    assert jnp.allclose(logp, logp_r, atol=1e-4, rtol=1e-4)
    assert jnp.allclose(ht, ht_r, atol=1e-4, rtol=1e-4)
    assert jnp.allclose(hidden, hidden_r, atol=1e-4, rtol=1e-4)

    print("KERNEL_OK")
</pallas_src>

<mosaic_0001>
module attributes {stable_mosaic.version = 11 : i64} {
  func.func @_bigru_kernel(%arg0: memref<8x2x1xf32, #tpu.memory_space<vmem>>, %arg1: memref<8x2x1xf32, #tpu.memory_space<vmem>>, %arg2: memref<1x384xf32, #tpu.memory_space<vmem>>, %arg3: memref<1x384xf32, #tpu.memory_space<vmem>>, %arg4: memref<1x384xf32, #tpu.memory_space<vmem>>, %arg5: memref<128x384xf32, #tpu.memory_space<vmem>>, %arg6: memref<1x384xf32, #tpu.memory_space<vmem>>, %arg7: memref<256x32xf32, #tpu.memory_space<vmem>>, %arg8: memref<1x32xf32, #tpu.memory_space<vmem>>, %arg9: memref<32x4xf32, #tpu.memory_space<vmem>>, %arg10: memref<1x4xf32, #tpu.memory_space<vmem>>, %arg11: memref<8x2x128xf32, #tpu.memory_space<vmem>>, %arg12: memref<2x4xf32, #tpu.memory_space<vmem>>, %arg13: memref<8x2x384xf32, #tpu.memory_space<vmem>>) attributes {dimension_semantics = [], scalar_prefetch = 0 : i64, scratch_operands = 1 : i64, tpu.core_type = #tpu.core_type<tc>} {
    %c0 = arith.constant 0 : index
    %c0_0 = arith.constant 0 : index
    %0 = vector.load %arg5[%c0, %c0_0] : memref<128x384xf32, #tpu.memory_space<vmem>>, vector<128x384xf32>
    %c0_1 = arith.constant 0 : index
    %c0_2 = arith.constant 0 : index
    %1 = vector.load %arg6[%c0_1, %c0_2] : memref<1x384xf32, #tpu.memory_space<vmem>>, vector<1x384xf32>
    %c0_3 = arith.constant 0 : index
    %c0_4 = arith.constant 0 : index
    %c0_5 = arith.constant 0 : index
    %2 = vector.load %arg0[%c0_3, %c0_4, %c0_5] : memref<8x2x1xf32, #tpu.memory_space<vmem>>, vector<8x2x1xf32>
    %c0_6 = arith.constant 0 : index
    %c0_7 = arith.constant 0 : index
    %3 = vector.load %arg2[%c0_6, %c0_7] : memref<1x384xf32, #tpu.memory_space<vmem>>, vector<1x384xf32>
    %4 = vector.shape_cast %3 : vector<1x384xf32> to vector<1x1x384xf32>
    %5 = vector.broadcast %2 : vector<8x2x1xf32> to vector<8x2x384xf32>
    %6 = vector.broadcast %4 : vector<1x1x384xf32> to vector<8x2x384xf32>
    %7 = arith.mulf %5, %6 : vector<8x2x384xf32>
    %c0_8 = arith.constant 0 : index
    %c0_9 = arith.constant 0 : index
    %c0_10 = arith.constant 0 : index
    %8 = vector.load %arg1[%c0_8, %c0_9, %c0_10] : memref<8x2x1xf32, #tpu.memory_space<vmem>>, vector<8x2x1xf32>
    %c0_11 = arith.constant 0 : index
    %c0_12 = arith.constant 0 : index
    %9 = vector.load %arg3[%c0_11, %c0_12] : memref<1x384xf32, #tpu.memory_space<vmem>>, vector<1x384xf32>
    %10 = vector.shape_cast %9 : vector<1x384xf32> to vector<1x1x384xf32>
    %11 = vector.broadcast %8 : vector<8x2x1xf32> to vector<8x2x384xf32>
    %12 = vector.broadcast %10 : vector<1x1x384xf32> to vector<8x2x384xf32>
    %13 = arith.mulf %11, %12 : vector<8x2x384xf32>
    %14 = arith.addf %7, %13 : vector<8x2x384xf32>
    %c0_13 = arith.constant 0 : index
    %c0_14 = arith.constant 0 : index
    %15 = vector.load %arg4[%c0_13, %c0_14] : memref<1x384xf32, #tpu.memory_space<vmem>>, vector<1x384xf32>
    %16 = vector.shape_cast %15 : vector<1x384xf32> to vector<1x1x384xf32>
    %17 = vector.broadcast %16 : vector<1x1x384xf32> to vector<8x2x384xf32>
    %18 = arith.addf %14, %17 : vector<8x2x384xf32>
    %c0_15 = arith.constant 0 : index
    %c0_16 = arith.constant 0 : index
    %c0_17 = arith.constant 0 : index
    %19 = vector.load %arg13[%c0_15, %c0_16, %c0_17] : memref<8x2x384xf32, #tpu.memory_space<vmem>>, vector<8x2x384xf32>
    tpu.vector_store %arg13[%c0_15, %c0_16, %c0_17], %18 {strides = array<i32>} : memref<8x2x384xf32, #tpu.memory_space<vmem>>, vector<8x2x384xf32>,
    %cst = arith.constant 0.000000e+00 : f32
    %20 = vector.broadcast %cst : f32 to vector<2x128xf32>
    %c0_18 = arith.constant 0 : index
    %c0_19 = arith.constant 0 : index
    %c0_20 = arith.constant 0 : index
    %21 = vector.load %arg13[%c0_18, %c0_19, %c0_20] : memref<8x2x384xf32, #tpu.memory_space<vmem>>, vector<1x2x384xf32>
    %22 = vector.shape_cast %21 : vector<1x2x384xf32> to vector<2x384xf32>
    %cst_21 = arith.constant dense<0.000000e+00> : vector<2x384xf32>
    %23 = tpu.matmul %20, %0, %cst_21 {dimension_numbers = #tpu.dot_dimension_numbers<[1], [0], [0], [1], [0, 0, 1, 1], [], []>} : vector<2x128xf32>, vector<128x384xf32>, vector<2x384xf32> -> vector<2x384xf32>
    %24 = vector.broadcast %1 : vector<1x384xf32> to vector<2x384xf32>
    %25 = arith.addf %23, %24 : vector<2x384xf32>
    %26 = vector.extract_strided_slice %22 {offsets = [0, 0], sizes = [2, 128], strides = [1, 1]} : vector<2x384xf32> to vector<2x128xf32>
    %27 = vector.extract_strided_slice %25 {offsets = [0, 0], sizes = [2, 128], strides = [1, 1]} : vector<2x384xf32> to vector<2x128xf32>
    %28 = arith.addf %26, %27 : vector<2x128xf32>
    %29 = arith.negf %28 : vector<2x128xf32>
    %30 = math.exp %29 : vector<2x128xf32>
    %cst_22 = arith.constant 1.000000e+00 : f32
    %31 = vector.broadcast %cst_22 : f32 to vector<2x128xf32>
    %32 = arith.addf %31, %30 : vector<2x128xf32>
    %33 = arith.divf %31, %32 : vector<2x128xf32>
    %34 = vector.extract_strided_slice %22 {offsets = [0, 128], sizes = [2, 128], strides = [1, 1]} : vector<2x384xf32> to vector<2x128xf32>
    %35 = vector.extract_strided_slice %25 {offsets = [0, 128], sizes = [2, 128], strides = [1, 1]} : vector<2x384xf32> to vector<2x128xf32>
    %36 = arith.addf %34, %35 : vector<2x128xf32>
    %37 = arith.negf %36 : vector<2x128xf32>
    %38 = math.exp %37 : vector<2x128xf32>
    %cst_23 = arith.constant 1.000000e+00 : f32
    %39 = vector.broadcast %cst_23 : f32 to vector<2x128xf32>
    %40 = arith.addf %39, %38 : vector<2x128xf32>
    %41 = arith.divf %39, %40 : vector<2x128xf32>
    %42 = vector.extract_strided_slice %22 {offsets = [0, 256], sizes = [2, 128], strides = [1, 1]} : vector<2x384xf32> to vector<2x128xf32>
    %43 = vector.extract_strided_slice %25 {offsets = [0, 256], sizes = [2, 128], strides = [1, 1]} : vector<2x384xf32> to vector<2x128xf32>
    %44 = arith.mulf %33, %43 : vector<2x128xf32>
    %45 = arith.addf %42, %44 : vector<2x128xf32>
    %46 = math.tanh %45 : vector<2x128xf32>
    %cst_24 = arith.constant 1.000000e+00 : f32
    %47 = vector.broadcast %cst_24 : f32 to vector<2x128xf32>
    %48 = arith.subf %47, %41 : vector<2x128xf32>
    %49 = arith.mulf %48, %46 : vector<2x128xf32>
    %50 = arith.mulf %41, %20 : vector<2x128xf32>
    %51 = arith.addf %49, %50 : vector<2x128xf32>
    %c0_25 = arith.constant 0 : index
    %c0_26 = arith.constant 0 : index
    %c0_27 = arith.constant 0 : index
    %52 = vector.load %arg11[%c0_25, %c0_26, %c0_27] : memref<8x2x128xf32, #tpu.memory_space<vmem>>, vector<1x2x128xf32>
    %53 = vector.shape_cast %52 : vector<1x2x128xf32> to vector<2x128xf32>
    %54 = vector.shape_cast %51 : vector<2x128xf32> to vector<1x2x128xf32>
    tpu.vector_store %arg11[%c0_25, %c0_26, %c0_27], %54 {strides = array<i32>} : memref<8x2x128xf32, #tpu.memory_space<vmem>>, vector<1x2x128xf32>,
    %c1_i32 = arith.constant 1 : i32
    %55 = arith.index_cast %c1_i32 : i32 to index
    %c0_28 = arith.constant 0 : index
    %c0_29 = arith.constant 0 : index
    %56 = vector.load %arg13[%55, %c0_28, %c0_29] : memref<8x2x384xf32, #tpu.memory_space<vmem>>, vector<1x2x384xf32>
    %57 = vector.shape_cast %56 : vector<1x2x384xf32> to vector<2x384xf32>
    %cst_30 = arith.constant dense<0.000000e+00> : vector<2x384xf32>
    %58 = tpu.matmul %51, %0, %cst_30 {dimension_numbers = #tpu.dot_dimension_numbers<[1], [0], [0], [1], [0, 0, 1, 1], [], []>} : vector<2x128xf32>, vector<128x384xf32>, vector<2x384xf32> -> vector<2x384xf32>
    %59 = vector.broadcast %1 : vector<1x384xf32> to vector<2x384xf32>
    %60 = arith.addf %58, %59 : vector<2x384xf32>
    %61 = vector.extract_strided_slice %57 {offsets = [0, 0], sizes = [2, 128], strides = [1, 1]} : vector<2x384xf32> to vector<2x128xf32>
    %62 = vector.extract_strided_slice %60 {offsets = [0, 0], sizes = [2, 128], strides = [1, 1]} : vector<2x384xf32> to vector<2x128xf32>
    %63 = arith.addf %61, %62 : vector<2x128xf32>
    %64 = arith.negf %63 : vector<2x128xf32>
    %65 = math.exp %64 : vector<2x128xf32>
    %cst_31 = arith.constant 1.000000e+00 : f32
    %66 = vector.broadcast %cst_31 : f32 to vector<2x128xf32>
    %67 = arith.addf %66, %65 : vector<2x128xf32>
    %68 = arith.divf %66, %67 : vector<2x128xf32>
    %69 = vector.extract_strided_slice %57 {offsets = [0, 128], sizes = [2, 128], strides = [1, 1]} : vector<2x384xf32> to vector<2x128xf32>
    %70 = vector.extract_strided_slice %60 {offsets = [0, 128], sizes = [2, 128], strides = [1, 1]} : vector<2x384xf32> to vector<2x128xf32>
    %71 = arith.addf %69, %70 : vector<2x128xf32>
    %72 = arith.negf %71 : vector<2x128xf32>
    %73 = math.exp %72 : vector<2x128xf32>
    %cst_32 = arith.constant 1.000000e+00 : f32
    %74 = vector.broadcast %cst_32 : f32 to vector<2x128xf32>
    %75 = arith.addf %74, %73 : vector<2x128xf32>
    %76 = arith.divf %74, %75 : vector<2x128xf32>
    %77 = vector.extract_strided_slice %57 {offsets = [0, 256], sizes = [2, 128], strides = [1, 1]} : vector<2x384xf32> to vector<2x128xf32>
    %78 = vector.extract_strided_slice %60 {offsets = [0, 256], sizes = [2, 128], strides = [1, 1]} : vector<2x384xf32> to vector<2x128xf32>
    %79 = arith.mulf %68, %78 : vector<2x128xf32>
    %80 = arith.addf %77, %79 : vector<2x128xf32>
    %81 = math.tanh %80 : vector<2x128xf32>
    %cst_33 = arith.constant 1.000000e+00 : f32
    %82 = vector.broadcast %cst_33 : f32 to vector<2x128xf32>
    %83 = arith.subf %82, %76 : vector<2x128xf32>
    %84 = arith.mulf %83, %81 : vector<2x128xf32>
    %85 = arith.mulf %76, %51 : vector<2x128xf32>
    %86 = arith.addf %84, %85 : vector<2x128xf32>
    %87 = arith.index_cast %c1_i32 : i32 to index
    %c0_34 = arith.constant 0 : index
    %c0_35 = arith.constant 0 : index
    %88 = vector.load %arg11[%87, %c0_34, %c0_35] : memref<8x2x128xf32, #tpu.memory_space<vmem>>, vector<1x2x128xf32>
    %89 = vector.shape_cast %88 : vector<1x2x128xf32> to vector<2x128xf32>
    %90 = vector.shape_cast %86 : vector<2x128xf32> to vector<1x2x128xf32>
    tpu.vector_store %arg11[%87, %c0_34, %c0_35], %90 {strides = array<i32>} : memref<8x2x128xf32, #tpu.memory_space<vmem>>, vector<1x2x128xf32>,
    %c2_i32 = arith.constant 2 : i32
    %91 = arith.index_cast %c2_i32 : i32 to index
    %c0_36 = arith.constant 0 : index
    %c0_37 = arith.constant 0 : index
    %92 = vector.load %arg13[%91, %c0_36, %c0_37] : memref<8x2x384xf32, #tpu.memory_space<vmem>>, vector<1x2x384xf32>
    %93 = vector.shape_cast %92 : vector<1x2x384xf32> to vector<2x384xf32>
    %cst_38 = arith.constant dense<0.000000e+00> : vector<2x384xf32>
    %94 = tpu.matmul %86, %0, %cst_38 {dimension_numbers = #tpu.dot_dimension_numbers<[1], [0], [0], [1], [0, 0, 1, 1], [], []>} : vector<2x128xf32>, vector<128x384xf32>, vector<2x384xf32> -> vector<2x384xf32>
    %95 = vector.broadcast %1 : vector<1x384xf32> to vector<2x384xf32>
    %96 = arith.addf %94, %95 : vector<2x384xf32>
    %97 = vector.extract_strided_slice %93 {offsets = [0, 0], sizes = [2, 128], strides = [1, 1]} : vector<2x384xf32> to vector<2x128xf32>
    %98 = vector.extract_strided_slice %96 {offsets = [0, 0], sizes = [2, 128], strides = [1, 1]} : vector<2x384xf32> to vector<2x128xf32>
    %99 = arith.addf %97, %98 : vector<2x128xf32>
    %100 = arith.negf %99 : vector<2x128xf32>
    %101 = math.exp %100 : vector<2x128xf32>
    %cst_39 = arith.constant 1.000000e+00 : f32
    %102 = vector.broadcast %cst_39 : f32 to vector<2x128xf32>
    %103 = arith.addf %102, %101 : vector<2x128xf32>
    %104 = arith.divf %102, %103 : vector<2x128xf32>
    %105 = vector.extract_strided_slice %93 {offsets = [0, 128], sizes = [2, 128], strides = [1, 1]} : vector<2x384xf32> to vector<2x128xf32>
    %106 = vector.extract_strided_slice %96 {offsets = [0, 128], sizes = [2, 128], strides = [1, 1]} : vector<2x384xf32> to vector<2x128xf32>
    %107 = arith.addf %105, %106 : vector<2x128xf32>
    %108 = arith.negf %107 : vector<2x128xf32>
    %109 = math.exp %108 : vector<2x128xf32>
    %cst_40 = arith.constant 1.000000e+00 : f32
    %110 = vector.broadcast %cst_40 : f32 to vector<2x128xf32>
    %111 = arith.addf %110, %109 : vector<2x128xf32>
    %112 = arith.divf %110, %111 : vector<2x128xf32>
    %113 = vector.extract_strided_slice %93 {offsets = [0, 256], sizes = [2, 128], strides = [1, 1]} : vector<2x384xf32> to vector<2x128xf32>
    %114 = vector.extract_strided_slice %96 {offsets = [0, 256], sizes = [2, 128], strides = [1, 1]} : vector<2x384xf32> to vector<2x128xf32>
    %115 = arith.mulf %104, %114 : vector<2x128xf32>
    %116 = arith.addf %113, %115 : vector<2x128xf32>
    %117 = math.tanh %116 : vector<2x128xf32>
    %cst_41 = arith.constant 1.000000e+00 : f32
    %118 = vector.broadcast %cst_41 : f32 to vector<2x128xf32>
    %119 = arith.subf %118, %112 : vector<2x128xf32>
    %120 = arith.mulf %119, %117 : vector<2x128xf32>
    %121 = arith.mulf %112, %86 : vector<2x128xf32>
    %122 = arith.addf %120, %121 : vector<2x128xf32>
    %123 = arith.index_cast %c2_i32 : i32 to index
    %c0_42 = arith.constant 0 : index
    %c0_43 = arith.constant 0 : index
    %124 = vector.load %arg11[%123, %c0_42, %c0_43] : memref<8x2x128xf32, #tpu.memory_space<vmem>>, vector<1x2x128xf32>
    %125 = vector.shape_cast %124 : vector<1x2x128xf32> to vector<2x128xf32>
    %126 = vector.shape_cast %122 : vector<2x128xf32> to vector<1x2x128xf32>
    tpu.vector_store %arg11[%123, %c0_42, %c0_43], %126 {strides = array<i32>} : memref<8x2x128xf32, #tpu.memory_space<vmem>>, vector<1x2x128xf32>,
    %c3_i32 = arith.constant 3 : i32
    %127 = arith.index_cast %c3_i32 : i32 to index
    %c0_44 = arith.constant 0 : index
    %c0_45 = arith.constant 0 : index
    %128 = vector.load %arg13[%127, %c0_44, %c0_45] : memref<8x2x384xf32, #tpu.memory_space<vmem>>, vector<1x2x384xf32>
    %129 = vector.shape_cast %128 : vector<1x2x384xf32> to vector<2x384xf32>
    %cst_46 = arith.constant dense<0.000000e+00> : vector<2x384xf32>
    %130 = tpu.matmul %122, %0, %cst_46 {dimension_numbers = #tpu.dot_dimension_numbers<[1], [0], [0], [1], [0, 0, 1, 1], [], []>} : vector<2x128xf32>, vector<128x384xf32>, vector<2x384xf32> -> vector<2x384xf32>
    %131 = vector.broadcast %1 : vector<1x384xf32> to vector<2x384xf32>
    %132 = arith.addf %130, %131 : vector<2x384xf32>
    %133 = vector.extract_strided_slice %129 {offsets = [0, 0], sizes = [2, 128], strides = [1, 1]} : vector<2x384xf32> to vector<2x128xf32>
    %134 = vector.extract_strided_slice %132 {offsets = [0, 0], sizes = [2, 128], strides = [1, 1]} : vector<2x384xf32> to vector<2x128xf32>
    %135 = arith.addf %133, %134 : vector<2x128xf32>
    %136 = arith.negf %135 : vector<2x128xf32>
    %137 = math.exp %136 : vector<2x128xf32>
    %cst_47 = arith.constant 1.000000e+00 : f32
    %138 = vector.broadcast %cst_47 : f32 to vector<2x128xf32>
    %139 = arith.addf %138, %137 : vector<2x128xf32>
    %140 = arith.divf %138, %139 : vector<2x128xf32>
    %141 = vector.extract_strided_slice %129 {offsets = [0, 128], sizes = [2, 128], strides = [1, 1]} : vector<2x384xf32> to vector<2x128xf32>
    %142 = vector.extract_strided_slice %132 {offsets = [0, 128], sizes = [2, 128], strides = [1, 1]} : vector<2x384xf32> to vector<2x128xf32>
    %143 = arith.addf %141, %142 : vector<2x128xf32>
    %144 = arith.negf %143 : vector<2x128xf32>
    %145 = math.exp %144 : vector<2x128xf32>
    %cst_48 = arith.constant 1.000000e+00 : f32
    %146 = vector.broadcast %cst_48 : f32 to vector<2x128xf32>
    %147 = arith.addf %146, %145 : vector<2x128xf32>
    %148 = arith.divf %146, %147 : vector<2x128xf32>
    %149 = vector.extract_strided_slice %129 {offsets = [0, 256], sizes = [2, 128], strides = [1, 1]} : vector<2x384xf32> to vector<2x128xf32>
    %150 = vector.extract_strided_slice %132 {offsets = [0, 256], sizes = [2, 128], strides = [1, 1]} : vector<2x384xf32> to vector<2x128xf32>
    %151 = arith.mulf %140, %150 : vector<2x128xf32>
    %152 = arith.addf %149, %151 : vector<2x128xf32>
    %153 = math.tanh %152 : vector<2x128xf32>
    %cst_49 = arith.constant 1.000000e+00 : f32
    %154 = vector.broadcast %cst_49 : f32 to vector<2x128xf32>
    %155 = arith.subf %154, %148 : vector<2x128xf32>
    %156 = arith.mulf %155, %153 : vector<2x128xf32>
    %157 = arith.mulf %148, %122 : vector<2x128xf32>
    %158 = arith.addf %156, %157 : vector<2x128xf32>
    %159 = arith.index_cast %c3_i32 : i32 to index
    %c0_50 = arith.constant 0 : index
    %c0_51 = arith.constant 0 : index
    %160 = vector.load %arg11[%159, %c0_50, %c0_51] : memref<8x2x128xf32, #tpu.memory_space<vmem>>, vector<1x2x128xf32>
    %161 = vector.shape_cast %160 : vector<1x2x128xf32> to vector<2x128xf32>
    %162 = vector.shape_cast %158 : vector<2x128xf32> to vector<1x2x128xf32>
    tpu.vector_store %arg11[%159, %c0_50, %c0_51], %162 {strides = array<i32>} : memref<8x2x128xf32, #tpu.memory_space<vmem>>, vector<1x2x128xf32>,
    %c4_i32 = arith.constant 4 : i32
    %163 = arith.index_cast %c4_i32 : i32 to index
    %c0_52 = arith.constant 0 : index
    %c0_53 = arith.constant 0 : index
    %164 = vector.load %arg13[%163, %c0_52, %c0_53] : memref<8x2x384xf32, #tpu.memory_space<vmem>>, vector<1x2x384xf32>
    %165 = vector.shape_cast %164 : vector<1x2x384xf32> to vector<2x384xf32>
    %cst_54 = arith.constant dense<0.000000e+00> : vector<2x384xf32>
    %166 = tpu.matmul %158, %0, %cst_54 {dimension_numbers = #tpu.dot_dimension_numbers<[1], [0], [0], [1], [0, 0, 1, 1], [], []>} : vector<2x128xf32>, vector<128x384xf32>, vector<2x384xf32> -> vector<2x384xf32>
    %167 = vector.broadcast %1 : vector<1x384xf32> to vector<2x384xf32>
    %168 = arith.addf %166, %167 : vector<2x384xf32>
    %169 = vector.extract_strided_slice %165 {offsets = [0, 0], sizes = [2, 128], strides = [1, 1]} : vector<2x384xf32> to vector<2x128xf32>
    %170 = vector.extract_strided_slice %168 {offsets = [0, 0], sizes = [2, 128], strides = [1, 1]} : vector<2x384xf32> to vector<2x128xf32>
    %171 = arith.addf %169, %170 : vector<2x128xf32>
    %172 = arith.negf %171 : vector<2x128xf32>
    %173 = math.exp %172 : vector<2x128xf32>
    %cst_55 = arith.constant 1.000000e+00 : f32
    %174 = vector.broadcast %cst_55 : f32 to vector<2x128xf32>
    %175 = arith.addf %174, %173 : vector<2x128xf32>
    %176 = arith.divf %174, %175 : vector<2x128xf32>
    %177 = vector.extract_strided_slice %165 {offsets = [0, 128], sizes = [2, 128], strides = [1, 1]} : vector<2x384xf32> to vector<2x128xf32>
    %178 = vector.extract_strided_slice %168 {offsets = [0, 128], sizes = [2, 128], strides = [1, 1]} : vector<2x384xf32> to vector<2x128xf32>
    %179 = arith.addf %177, %178 : vector<2x128xf32>
    %180 = arith.negf %179 : vector<2x128xf32>
    %181 = math.exp %180 : vector<2x128xf32>
    %cst_56 = arith.constant 1.000000e+00 : f32
    %182 = vector.broadcast %cst_56 : f32 to vector<2x128xf32>
    %183 = arith.addf %182, %181 : vector<2x128xf32>
    %184 = arith.divf %182, %183 : vector<2x128xf32>
    %185 = vector.extract_strided_slice %165 {offsets = [0, 256], sizes = [2, 128], strides = [1, 1]} : vector<2x384xf32> to vector<2x128xf32>
    %186 = vector.extract_strided_slice %168 {offsets = [0, 256], sizes = [2, 128], strides = [1, 1]} : vector<2x384xf32> to vector<2x128xf32>
    %187 = arith.mulf %176, %186 : vector<2x128xf32>
    %188 = arith.addf %185, %187 : vector<2x128xf32>
    %189 = math.tanh %188 : vector<2x128xf32>
    %cst_57 = arith.constant 1.000000e+00 : f32
    %190 = vector.broadcast %cst_57 : f32 to vector<2x128xf32>
    %191 = arith.subf %190, %184 : vector<2x128xf32>
    %192 = arith.mulf %191, %189 : vector<2x128xf32>
    %193 = arith.mulf %184, %158 : vector<2x128xf32>
    %194 = arith.addf %192, %193 : vector<2x128xf32>
    %195 = arith.index_cast %c4_i32 : i32 to index
    %c0_58 = arith.constant 0 : index
    %c0_59 = arith.constant 0 : index
    %196 = vector.load %arg11[%195, %c0_58, %c0_59] : memref<8x2x128xf32, #tpu.memory_space<vmem>>, vector<1x2x128xf32>
    %197 = vector.shape_cast %196 : vector<1x2x128xf32> to vector<2x128xf32>
    %198 = vector.shape_cast %194 : vector<2x128xf32> to vector<1x2x128xf32>
    tpu.vector_store %arg11[%195, %c0_58, %c0_59], %198 {strides = array<i32>} : memref<8x2x128xf32, #tpu.memory_space<vmem>>, vector<1x2x128xf32>,
    %c5_i32 = arith.constant 5 : i32
    %199 = arith.index_cast %c5_i32 : i32 to index
    %c0_60 = arith.constant 0 : index
    %c0_61 = arith.constant 0 : index
    %200 = vector.load %arg13[%199, %c0_60, %c0_61] : memref<8x2x384xf32, #tpu.memory_space<vmem>>, vector<1x2x384xf32>
    %201 = vector.shape_cast %200 : vector<1x2x384xf32> to vector<2x384xf32>
    %cst_62 = arith.constant dense<0.000000e+00> : vector<2x384xf32>
    %202 = tpu.matmul %194, %0, %cst_62 {dimension_numbers = #tpu.dot_dimension_numbers<[1], [0], [0], [1], [0, 0, 1, 1], [], []>} : vector<2x128xf32>, vector<128x384xf32>, vector<2x384xf32> -> vector<2x384xf32>
    %203 = vector.broadcast %1 : vector<1x384xf32> to vector<2x384xf32>
    %204 = arith.addf %202, %203 : vector<2x384xf32>
    %205 = vector.extract_strided_slice %201 {offsets = [0, 0], sizes = [2, 128], strides = [1, 1]} : vector<2x384xf32> to vector<2x128xf32>
    %206 = vector.extract_strided_slice %204 {offsets = [0, 0], sizes = [2, 128], strides = [1, 1]} : vector<2x384xf32> to vector<2x128xf32>
    %207 = arith.addf %205, %206 : vector<2x128xf32>
    %208 = arith.negf %207 : vector<2x128xf32>
    %209 = math.exp %208 : vector<2x128xf32>
    %cst_63 = arith.constant 1.000000e+00 : f32
    %210 = vector.broadcast %cst_63 : f32 to vector<2x128xf32>
    %211 = arith.addf %210, %209 : vector<2x128xf32>
    %212 = arith.divf %210, %211 : vector<2x128xf32>
    %213 = vector.extract_strided_slice %201 {offsets = [0, 128], sizes = [2, 128], strides = [1, 1]} : vector<2x384xf32> to vector<2x128xf32>
    %214 = vector.extract_strided_slice %204 {offsets = [0, 128], sizes = [2, 128], strides = [1, 1]} : vector<2x384xf32> to vector<2x128xf32>
    %215 = arith.addf %213, %214 : vector<2x128xf32>
    %216 = arith.negf %215 : vector<2x128xf32>
    %217 = math.exp %216 : vector<2x128xf32>
    %cst_64 = arith.constant 1.000000e+00 : f32
    %218 = vector.broadcast %cst_64 : f32 to vector<2x128xf32>
    %219 = arith.addf %218, %217 : vector<2x128xf32>
    %220 = arith.divf %218, %219 : vector<2x128xf32>
    %221 = vector.extract_strided_slice %201 {offsets = [0, 256], sizes = [2, 128], strides = [1, 1]} : vector<2x384xf32> to vector<2x128xf32>
    %222 = vector.extract_strided_slice %204 {offsets = [0, 256], sizes = [2, 128], strides = [1, 1]} : vector<2x384xf32> to vector<2x128xf32>
    %223 = arith.mulf %212, %222 : vector<2x128xf32>
    %224 = arith.addf %221, %223 : vector<2x128xf32>
    %225 = math.tanh %224 : vector<2x128xf32>
    %cst_65 = arith.constant 1.000000e+00 : f32
    %226 = vector.broadcast %cst_65 : f32 to vector<2x128xf32>
    %227 = arith.subf %226, %220 : vector<2x128xf32>
    %228 = arith.mulf %227, %225 : vector<2x128xf32>
    %229 = arith.mulf %220, %194 : vector<2x128xf32>
    %230 = arith.addf %228, %229 : vector<2x128xf32>
    %231 = arith.index_cast %c5_i32 : i32 to index
    %c0_66 = arith.constant 0 : index
    %c0_67 = arith.constant 0 : index
    %232 = vector.load %arg11[%231, %c0_66, %c0_67] : memref<8x2x128xf32, #tpu.memory_space<vmem>>, vector<1x2x128xf32>
    %233 = vector.shape_cast %232 : vector<1x2x128xf32> to vector<2x128xf32>
    %234 = vector.shape_cast %230 : vector<2x128xf32> to vector<1x2x128xf32>
    tpu.vector_store %arg11[%231, %c0_66, %c0_67], %234 {strides = array<i32>} : memref<8x2x128xf32, #tpu.memory_space<vmem>>, vector<1x2x128xf32>,
    %c6_i32 = arith.constant 6 : i32
    %235 = arith.index_cast %c6_i32 : i32 to index
    %c0_68 = arith.constant 0 : index
    %c0_69 = arith.constant 0 : index
    %236 = vector.load %arg13[%235, %c0_68, %c0_69] : memref<8x2x384xf32, #tpu.memory_space<vmem>>, vector<1x2x384xf32>
    %237 = vector.shape_cast %236 : vector<1x2x384xf32> to vector<2x384xf32>
    %cst_70 = arith.constant dense<0.000000e+00> : vector<2x384xf32>
    %238 = tpu.matmul %230, %0, %cst_70 {dimension_numbers = #tpu.dot_dimension_numbers<[1], [0], [0], [1], [0, 0, 1, 1], [], []>} : vector<2x128xf32>, vector<128x384xf32>, vector<2x384xf32> -> vector<2x384xf32>
    %239 = vector.broadcast %1 : vector<1x384xf32> to vector<2x384xf32>
    %240 = arith.addf %238, %239 : vector<2x384xf32>
    %241 = vector.extract_strided_slice %237 {offsets = [0, 0], sizes = [2, 128], strides = [1, 1]} : vector<2x384xf32> to vector<2x128xf32>
    %242 = vector.extract_strided_slice %240 {offsets = [0, 0], sizes = [2, 128], strides = [1, 1]} : vector<2x384xf32> to vector<2x128xf32>
    %243 = arith.addf %241, %242 : vector<2x128xf32>
    %244 = arith.negf %243 : vector<2x128xf32>
    %245 = math.exp %244 : vector<2x128xf32>
    %cst_71 = arith.constant 1.000000e+00 : f32
    %246 = vector.broadcast %cst_71 : f32 to vector<2x128xf32>
    %247 = arith.addf %246, %245 : vector<2x128xf32>
    %248 = arith.divf %246, %247 : vector<2x128xf32>
    %249 = vector.extract_strided_slice %237 {offsets = [0, 128], sizes = [2, 128], strides = [1, 1]} : vector<2x384xf32> to vector<2x128xf32>
    %250 = vector.extract_strided_slice %240 {offsets = [0, 128], sizes = [2, 128], strides = [1, 1]} : vector<2x384xf32> to vector<2x128xf32>
    %251 = arith.addf %249, %250 : vector<2x128xf32>
    %252 = arith.negf %251 : vector<2x128xf32>
    %253 = math.exp %252 : vector<2x128xf32>
    %cst_72 = arith.constant 1.000000e+00 : f32
    %254 = vector.broadcast %cst_72 : f32 to vector<2x128xf32>
    %255 = arith.addf %254, %253 : vector<2x128xf32>
    %256 = arith.divf %254, %255 : vector<2x128xf32>
    %257 = vector.extract_strided_slice %237 {offsets = [0, 256], sizes = [2, 128], strides = [1, 1]} : vector<2x384xf32> to vector<2x128xf32>
    %258 = vector.extract_strided_slice %240 {offsets = [0, 256], sizes = [2, 128], strides = [1, 1]} : vector<2x384xf32> to vector<2x128xf32>
    %259 = arith.mulf %248, %258 : vector<2x128xf32>
    %260 = arith.addf %257, %259 : vector<2x128xf32>
    %261 = math.tanh %260 : vector<2x128xf32>
    %cst_73 = arith.constant 1.000000e+00 : f32
    %262 = vector.broadcast %cst_73 : f32 to vector<2x128xf32>
    %263 = arith.subf %262, %256 : vector<2x128xf32>
    %264 = arith.mulf %263, %261 : vector<2x128xf32>
    %265 = arith.mulf %256, %230 : vector<2x128xf32>
    %266 = arith.addf %264, %265 : vector<2x128xf32>
    %267 = arith.index_cast %c6_i32 : i32 to index
    %c0_74 = arith.constant 0 : index
    %c0_75 = arith.constant 0 : index
    %268 = vector.load %arg11[%267, %c0_74, %c0_75] : memref<8x2x128xf32, #tpu.memory_space<vmem>>, vector<1x2x128xf32>
    %269 = vector.shape_cast %268 : vector<1x2x128xf32> to vector<2x128xf32>
    %270 = vector.shape_cast %266 : vector<2x128xf32> to vector<1x2x128xf32>
    tpu.vector_store %arg11[%267, %c0_74, %c0_75], %270 {strides = array<i32>} : memref<8x2x128xf32, #tpu.memory_space<vmem>>, vector<1x2x128xf32>,
    %c7_i32 = arith.constant 7 : i32
    %271 = arith.index_cast %c7_i32 : i32 to index
    %c0_76 = arith.constant 0 : index
    %c0_77 = arith.constant 0 : index
    %272 = vector.load %arg13[%271, %c0_76, %c0_77] : memref<8x2x384xf32, #tpu.memory_space<vmem>>, vector<1x2x384xf32>
    %273 = vector.shape_cast %272 : vector<1x2x384xf32> to vector<2x384xf32>
    %cst_78 = arith.constant dense<0.000000e+00> : vector<2x384xf32>
    %274 = tpu.matmul %266, %0, %cst_78 {dimension_numbers = #tpu.dot_dimension_numbers<[1], [0], [0], [1], [0, 0, 1, 1], [], []>} : vector<2x128xf32>, vector<128x384xf32>, vector<2x384xf32> -> vector<2x384xf32>
    %275 = vector.broadcast %1 : vector<1x384xf32> to vector<2x384xf32>
    %276 = arith.addf %274, %275 : vector<2x384xf32>
    %277 = vector.extract_strided_slice %273 {offsets = [0, 0], sizes = [2, 128], strides = [1, 1]} : vector<2x384xf32> to vector<2x128xf32>
    %278 = vector.extract_strided_slice %276 {offsets = [0, 0], sizes = [2, 128], strides = [1, 1]} : vector<2x384xf32> to vector<2x128xf32>
    %279 = arith.addf %277, %278 : vector<2x128xf32>
    %280 = arith.negf %279 : vector<2x128xf32>
    %281 = math.exp %280 : vector<2x128xf32>
    %cst_79 = arith.constant 1.000000e+00 : f32
    %282 = vector.broadcast %cst_79 : f32 to vector<2x128xf32>
    %283 = arith.addf %282, %281 : vector<2x128xf32>
    %284 = arith.divf %282, %283 : vector<2x128xf32>
    %285 = vector.extract_strided_slice %273 {offsets = [0, 128], sizes = [2, 128], strides = [1, 1]} : vector<2x384xf32> to vector<2x128xf32>
    %286 = vector.extract_strided_slice %276 {offsets = [0, 128], sizes = [2, 128], strides = [1, 1]} : vector<2x384xf32> to vector<2x128xf32>
    %287 = arith.addf %285, %286 : vector<2x128xf32>
    %288 = arith.negf %287 : vector<2x128xf32>
    %289 = math.exp %288 : vector<2x128xf32>
    %cst_80 = arith.constant 1.000000e+00 : f32
    %290 = vector.broadcast %cst_80 : f32 to vector<2x128xf32>
    %291 = arith.addf %290, %289 : vector<2x128xf32>
    %292 = arith.divf %290, %291 : vector<2x128xf32>
    %293 = vector.extract_strided_slice %273 {offsets = [0, 256], sizes = [2, 128], strides = [1, 1]} : vector<2x384xf32> to vector<2x128xf32>
    %294 = vector.extract_strided_slice %276 {offsets = [0, 256], sizes = [2, 128], strides = [1, 1]} : vector<2x384xf32> to vector<2x128xf32>
    %295 = arith.mulf %284, %294 : vector<2x128xf32>
    %296 = arith.addf %293, %295 : vector<2x128xf32>
    %297 = math.tanh %296 : vector<2x128xf32>
    %cst_81 = arith.constant 1.000000e+00 : f32
    %298 = vector.broadcast %cst_81 : f32 to vector<2x128xf32>
    %299 = arith.subf %298, %292 : vector<2x128xf32>
    %300 = arith.mulf %299, %297 : vector<2x128xf32>
    %301 = arith.mulf %292, %266 : vector<2x128xf32>
    %302 = arith.addf %300, %301 : vector<2x128xf32>
    %303 = arith.index_cast %c7_i32 : i32 to index
    %c0_82 = arith.constant 0 : index
    %c0_83 = arith.constant 0 : index
    %304 = vector.load %arg11[%303, %c0_82, %c0_83] : memref<8x2x128xf32, #tpu.memory_space<vmem>>, vector<1x2x128xf32>
    %305 = vector.shape_cast %304 : vector<1x2x128xf32> to vector<2x128xf32>
    %306 = vector.shape_cast %302 : vector<2x128xf32> to vector<1x2x128xf32>
    tpu.vector_store %arg11[%303, %c0_82, %c0_83], %306 {strides = array<i32>} : memref<8x2x128xf32, #tpu.memory_space<vmem>>, vector<1x2x128xf32>,
    %c7_i32_84 = arith.constant 7 : i32
    %307 = tpu.concatenate %302, %51 in 1 : vector<2x128xf32>, vector<2x128xf32> -> vector<2x256xf32>
    %c0_85 = arith.constant 0 : index
    %c0_86 = arith.constant 0 : index
    %308 = vector.load %arg7[%c0_85, %c0_86] : memref<256x32xf32, #tpu.memory_space<vmem>>, vector<256x32xf32>
    %cst_87 = arith.constant dense<0.000000e+00> : vector<2x32xf32>
    %309 = tpu.matmul %307, %308, %cst_87 {dimension_numbers = #tpu.dot_dimension_numbers<[1], [0], [0], [1], [0, 0, 1, 1], [], []>} : vector<2x256xf32>, vector<256x32xf32>, vector<2x32xf32> -> vector<2x32xf32>
    %c0_88 = arith.constant 0 : index
    %c0_89 = arith.constant 0 : index
    %310 = vector.load %arg8[%c0_88, %c0_89] : memref<1x32xf32, #tpu.memory_space<vmem>>, vector<1x32xf32>
    %311 = vector.broadcast %310 : vector<1x32xf32> to vector<2x32xf32>
    %312 = arith.addf %309, %311 : vector<2x32xf32>
    %cst_90 = arith.constant 0.000000e+00 : f32
    %313 = vector.broadcast %cst_90 : f32 to vector<2x32xf32>
    %314 = arith.maximumf %312, %313 : vector<2x32xf32>
    %c0_91 = arith.constant 0 : index
    %c0_92 = arith.constant 0 : index
    %315 = vector.load %arg9[%c0_91, %c0_92] : memref<32x4xf32, #tpu.memory_space<vmem>>, vector<32x4xf32>
    %cst_93 = arith.constant dense<0.000000e+00> : vector<2x4xf32>
    %316 = tpu.matmul %314, %315, %cst_93 {dimension_numbers = #tpu.dot_dimension_numbers<[1], [0], [0], [1], [0, 0, 1, 1], [], []>} : vector<2x32xf32>, vector<32x4xf32>, vector<2x4xf32> -> vector<2x4xf32>
    %c0_94 = arith.constant 0 : index
    %c0_95 = arith.constant 0 : index
    %317 = vector.load %arg10[%c0_94, %c0_95] : memref<1x4xf32, #tpu.memory_space<vmem>>, vector<1x4xf32>
    %318 = vector.broadcast %317 : vector<1x4xf32> to vector<2x4xf32>
    %319 = arith.addf %316, %318 : vector<2x4xf32>
    %cst_96 = arith.constant 0.000000e+00 : f32
    %320 = vector.broadcast %cst_96 : f32 to vector<2x4xf32>
    %321 = arith.maximumf %319, %320 : vector<2x4xf32>
    %cst_97 = arith.constant dense<0xFF800000> : vector<2xf32>
    %322 = vector.multi_reduction <maximumf>, %321, %cst_97 [1] : vector<2x4xf32> to vector<2xf32>
    %323 = vector.shape_cast %322 : vector<2xf32> to vector<2x1xf32>
    %324 = vector.broadcast %323 : vector<2x1xf32> to vector<2x4xf32>
    %325 = arith.subf %321, %324 : vector<2x4xf32>
    %326 = math.exp %325 : vector<2x4xf32>
    %cst_98 = arith.constant dense<0.000000e+00> : vector<2xf32>
    %327 = vector.multi_reduction <add>, %326, %cst_98 [1] : vector<2x4xf32> to vector<2xf32>
    %328 = vector.shape_cast %327 : vector<2xf32> to vector<2x1xf32>
    %329 = math.log %328 : vector<2x1xf32>
    %330 = vector.broadcast %329 : vector<2x1xf32> to vector<2x4xf32>
    %331 = arith.subf %325, %330 : vector<2x4xf32>
    %c0_99 = arith.constant 0 : index
    %c0_100 = arith.constant 0 : index
    %332 = vector.load %arg12[%c0_99, %c0_100] : memref<2x4xf32, #tpu.memory_space<vmem>>, vector<2x4xf32>
    tpu.vector_store %arg12[%c0_99, %c0_100], %331 {strides = array<i32>} : memref<2x4xf32, #tpu.memory_space<vmem>>, vector<2x4xf32>,
    return
  }
}

</mosaic_0001>

<bundles_post_ra>
// kernel: analysis_bigru_forward.1
= control target key start
LH: loop header
LB: loop body
LE: loop exit
PB: predicated region body
PF: predicated region fallthrough
CT: control target
= control target key end

     0   :  { %v4275_v4 = vmov 0.0   ;;  %v2766_v7 = vmov 0   ;;  %vm2767_vm0 = vmmov 0   ;;  %s4262_s0 = inlined_call_operand.vmem [shape: f32[8,2,1], index: 0, kind: input, shape index: {}]   ;;  %s4263_s1 = inlined_call_operand.vmem [shape: f32[8,2,1], index: 1, kind: input, shape index: {}]   ;;  %s4264_s2 = inlined_call_operand.vmem [shape: f32[1,384], index: 2, kind: input, shape index: {}]   ;;  %s4265_s3 = inlined_call_operand.vmem [shape: f32[1,384], index: 3, kind: input, shape index: {}]   ;;  %s4266_s4 = inlined_call_operand.vmem [shape: f32[1,384], index: 4, kind: input, shape index: {}]   ;;  %s4267_s5 = inlined_call_operand.vmem [shape: f32[128,384], index: 5, kind: input, shape index: {}]   ;;  %s4268_s6 = inlined_call_operand.vmem [shape: f32[1,384], index: 6, kind: input, shape index: {}]   ;;  %s4269_s7 = inlined_call_operand.vmem [shape: f32[256,32], index: 7, kind: input, shape index: {}]   ;;  %s4270_s8 = inlined_call_operand.vmem [shape: f32[1,32], index: 8, kind: input, shape index: {}]   ;;  %s4271_s9 = inlined_call_operand.vmem [shape: f32[32,4], index: 9, kind: input, shape index: {}]   ;;  %s4272_s10 = inlined_call_operand.vmem [shape: f32[1,4], index: 10, kind: input, shape index: {}]   ;;  %s4273_s11 = inlined_call_operand.vmem [shape: f32[8,2,128], index: 11, kind: output, shape index: {0}]   ;;  %s4274_s12 = inlined_call_operand.hbm [shape: f32[2,4], index: 12, kind: output, shape index: {1}]  }
   0x1   :  { %v2838_v0 = vld [vmem:[%s4267_s5 + $0x170] sm:$0xff]  ;;  %v2843_v1 = vld [vmem:[%s4267_s5 + $0x168] sm:$0xff]  ;;  %v2848_v2 = vld [vmem:[%s4267_s5 + $0x158] sm:$0xff]  ;;  %582 = vmatprep.mubr.f32.mxu0 %v4275_v4  ;;  %2313 = vmatprep.subr.mxu1 %v4275_v4 }
   0x2   :  { %4335 = vst [vmem:[#allocation6_spill] sm:$0xff] %v2838_v0  ;;  %518 = vmatprep.subr.mxu0 %v2838_v0  ;;  %v2854_v3 = vld [vmem:[%s4267_s5 + $0x150] sm:$0xff]  ;;  %v2861_v5 = vld [vmem:[%s4267_s5 + $0x140] sm:$0xff]  ;;  %v2868_v6 = vld [vmem:[%s4267_s5 + $0x138] sm:$0xff]  ;;  %2610 = vset.pattern.permute.xlu1 %v2766_v7 }
   0x3   :  { %519 = vmatpush1.msra.mxu0 %v2843_v1  ;;  %v2874_v8 = vld [vmem:[%s4267_s5 + $0x128] sm:$0xff]  ;;  %2609 = vset.pattern.permute.xlu0 %v2766_v7  ;;  %v2880_v9 = vld [vmem:[%s4267_s5 + $0x120] sm:$0xff]  ;;  %v2888_v10 = vld [vmem:[%s4267_s5 + $0x110] sm:$0xff] }
   0x4   :  { %520 = vmatprep.subr.mxu0 %v2848_v2  ;;  %2345 = vmatprep.mubr.msk.f32.mxu1 %vm2767_vm0, %v4275_v4  ;;  %v2894_v11 = vld [vmem:[%s4267_s5 + $0x108] sm:$0xff]  ;;  %v2900_v12 = vld [vmem:[%s4267_s5 + $0xf8] sm:$0xff]  ;;  %v2906_v13 = vld [vmem:[%s4267_s5 + $0xf0] sm:$0xff] }
   0x5   :  { %521 = vmatpush1.msra.mxu0 %v2854_v3  ;;  %v2912_v14 = vld [vmem:[%s4267_s5 + $0xe0] sm:$0xff]  ;;  %v2917_v15 = vld [vmem:[%s4267_s5 + $0x178] sm:$0xff]  ;;  %v2935_v18 = vld [vmem:[%s4267_s5 + $0xc8] sm:$0xff] }
   0x6   :  { %522 = vmatprep.subr.mxu0 %v2861_v5  ;;  %v2923_v16 = vld [vmem:[%s4267_s5 + $0xd8] sm:$0xff]  ;;  %2314 = vmatpush3.msra.mxu1 %v2917_v15  ;;  %v2929_v17 = vld [vmem:[%s4267_s5 + $0x160] sm:$0xff]  ;;  %v2941_v19 = vld [vmem:[%s4267_s5 + $0x148] sm:$0xff] }
   0x7   :  { %523 = vmatpush1.msra.mxu0 %v2868_v6  ;;  %2315 = vmatprep.subr.mxu1 %v4275_v4  ;;  %v2947_v20 = vld [vmem:[%s4267_s5 + $0xc0] sm:$0xff]  ;;  %v2954_v21 = vld [vmem:[%s4267_s5 + $0xb0] sm:$0xff]  ;;  %v2966_v23 = vld [vmem:[%s4267_s5 + $0xa8] sm:$0xff] }
   0x8   :  { %524 = vmatprep.subr.mxu0 %v2874_v8  ;;  %2316 = vmatpush3.msra.mxu1 %v2929_v17  ;;  %v2960_v22 = vld [vmem:[%s4267_s5 + $0x130] sm:$0xff]  ;;  %4336 = vst [vmem:[#allocation7_spill] sm:$0xff] %v2966_v23  ;;  %v2973_v24 = vld [vmem:[%s4267_s5 + $0x98] sm:$0xff]  ;;  %v2992_v27 = vld [vmem:[%s4267_s5 + $0x80] sm:$0xff] }
   0x9   :  { %525 = vmatpush1.msra.mxu0 %v2880_v9  ;;  %2317 = vmatprep.subr.mxu1 %v4275_v4  ;;  %4337 = vst [vmem:[#allocation8_spill] sm:$0xff] %v2973_v24  ;;  %v2979_v25 = vld [vmem:[%s4267_s5 + $0x118] sm:$0xff]  ;;  %v2985_v26 = vld [vmem:[%s4267_s5 + $0x90] sm:$0xff]  ;;  %4339 = vst [vmem:[#allocation10_spill] sm:$0xff] %v2992_v27 }
   0xa   :  { %526 = vmatprep.subr.mxu0 %v2888_v10  ;;  %2318 = vmatpush3.msra.mxu1 %v2941_v19  ;;  %4338 = vst [vmem:[#allocation9_spill] sm:$0xff] %v2985_v26  ;;  %v2998_v28 = vld [vmem:[%s4267_s5 + $0x100] sm:$0xff]  ;;  %v3004_v29 = vld [vmem:[%s4267_s5 + $0x78] sm:$0xff]  ;;  %v3011_v30 = vld [vmem:[%s4267_s5 + $0x68] sm:$0xff] }
   0xb   :  { %527 = vmatpush1.msra.mxu0 %v2894_v11  ;;  %2319 = vmatprep.subr.mxu1 %v4275_v4  ;;  %4340 = vst [vmem:[#allocation11_spill] sm:$0xff] %v3004_v29  ;;  %4341 = vst [vmem:[#allocation12_spill] sm:$0xff] %v3011_v30  ;;  %v3017_v31 = vld [vmem:[%s4267_s5 + $0xe8] sm:$0xff]  ;;  %v3023_v32 = vld [vmem:[%s4267_s5 + $0x60] sm:$0xff] }
   0xc   :  { %528 = vmatprep.subr.mxu0 %v2900_v12  ;;  %2320 = vmatpush3.msra.mxu1 %v2960_v22  ;;  %4342 = vst [vmem:[#allocation13_spill] sm:$0xff] %v3023_v32 }
   0xd   :  { %529 = vmatpush1.msra.mxu0 %v2906_v13  ;;  %2321 = vmatprep.subr.mxu1 %v4275_v4 }
   0xe   :  { %530 = vmatprep.subr.mxu0 %v2912_v14  ;;  %2322 = vmatpush3.msra.mxu1 %v2979_v25 }
   0xf   :  { %531 = vmatpush1.msra.mxu0 %v2923_v16  ;;  %2323 = vmatprep.subr.mxu1 %v4275_v4 }
  0x10   :  { %532 = vmatprep.subr.mxu0 %v2935_v18  ;;  %2324 = vmatpush3.msra.mxu1 %v2998_v28 }
  0x11   :  { %533 = vmatpush1.msra.mxu0 %v2947_v20 }
  0x12   :  { %534 = vmatprep.subr.mxu0 %v2954_v21 }
  0x13   :  { %535 = vmatpush1.msra.mxu0 %v2966_v23 }
  0x14   :  { %536 = vmatprep.subr.mxu0 %v2973_v24 }
  0x15   :  { %537 = vmatpush1.msra.mxu0 %v2985_v26 }
  0x16   :  { %538 = vmatprep.subr.mxu0 %v2992_v27 }
  0x17   :  { %18 = vsyncpa [#allocation4], 0  ;;  %539 = vmatpush1.msra.mxu0 %v3004_v29  ;;  %v3030_v33 = vld [vmem:[%s4267_s5 + $0x50] sm:$0xff]  ;;  %2325 = vmatprep.subr.mxu1 %v4275_v4  ;;  %v3042_v35 = vld [vmem:[%s4267_s5 + $0x48] sm:$0xff]  ;;  %vm2004_vm1 = vcmask 261120   ;;  %vm2079_vm2 = vcmask 25600  }
  0x18   :  { %4343 = vst [vmem:[#allocation14_spill] sm:$0xff] %v3030_v33  ;;  %v3036_v34 = vld [vmem:[%s4267_s5 + $0xd0] sm:$0xff]  ;;  %540 = vmatprep.subr.mxu0 %v3011_v30  ;;  %4344 = vst [vmem:[#allocation15_spill] sm:$0xff] %v3042_v35  ;;  %2326 = vmatpush3.msra.mxu1 %v3017_v31  ;;  %v3049_v36 = vld [vmem:[%s4267_s5 + $0x38] sm:$0xff] }
  0x19   :  { %541 = vmatpush1.msra.mxu0 %v3023_v32  ;;  %4345 = vst [vmem:[#allocation16_spill] sm:$0xff] %v3049_v36  ;;  %2327 = vmatprep.subr.mxu1 %v4275_v4  ;;  %v91_v37 = vld [vmem:[%s4262_s0 + $0x2] sm:$0x3]  ;;  %v3059_v38 = vld [vmem:[%s4267_s5 + $0x30] sm:$0xff]  ;;  %v90_v39 = vld [vmem:[%s4262_s0] sm:$0x3] }
  0x1a   :  { %542 = vmatprep.subr.mxu0 %v3030_v33  ;;  %4346 = vst [vmem:[#allocation17_spill] sm:$0xff] %v3059_v38  ;;  %2328 = vmatpush3.msra.mxu1 %v3036_v34  ;;  %v3069_v40 = vld [vmem:[%s4267_s5 + $0x20] sm:$0xff]  ;;  %v3075_v41 = vld [vmem:[%s4267_s5 + $0xb8] sm:$0xff]  ;;  %v3087_v43 = vld [vmem:[%s4267_s5 + $0x8] sm:$0xff] }
  0x1b   :  { %543 = vmatpush1.msra.mxu0 %v3042_v35  ;;  %4347 = vst [vmem:[#allocation18_spill] sm:$0xff] %v3069_v40  ;;  %2329 = vmatprep.subr.mxu1 %v4275_v4  ;;  %4348 = vst [vmem:[#allocation19_spill] sm:$0xff] %v3075_v41  ;;  %v3081_v42 = vld [vmem:[%s4267_s5 + $0x18] sm:$0xff]  ;;  %v3092_v44 = vld [vmem:[%s4267_s5 + $0xa0] sm:$0xff] }
  0x1c   :  { %544 = vmatprep.subr.mxu0 %v3049_v36  ;;  %4349 = vst [vmem:[#allocation20_spill] sm:$0xff] %v3081_v42  ;;  %106 = vperm.xlu1 %2610, %v91_v37   ;;  %4350 = vst [vmem:[#allocation21_spill] sm:$0xff] %v3087_v43  ;;  %v3098_v45 = vld [vmem:[%s4267_s5] sm:$0xff]  ;;  %v3114_v48 = vld [vmem:[%s4267_s5 + $0x88] sm:$0xff] }
  0x1d   :  { %545 = vmatpush1.msra.mxu0 %v3059_v38  ;;  %101 = vperm.xlu0 %2609, %v90_v39   ;;  %4351 = vst [vmem:[#allocation22_spill] sm:$0xff] %v3092_v44  ;;  %4352 = vst [vmem:[#allocation23_spill] sm:$0xff] %v3098_v45  ;;  %v180_v46 = vld [vmem:[%s4263_s1 + $0x2] sm:$0x3]  ;;  %v179_v47 = vld [vmem:[%s4263_s1] sm:$0x3]  ;;  %v140_v39 = vlaneseq }
  0x1e   :  { %546 = vmatprep.subr.mxu0 %v3069_v40  ;;  %2330 = vmatpush3.msra.mxu1 %v3075_v41  ;;  %4353 = vst [vmem:[#allocation24_spill] sm:$0xff] %v3114_v48  ;;  %v3122_v49 = vld [vmem:[%s4267_s5 + $0x70] sm:$0xff]  ;;  %v181_v50 = vld [vmem:[%s4263_s1 + $0x4] sm:$0x3]  ;;  %v3135_v52 = vld [vmem:[%s4267_s5 + $0x58] sm:$0xff] }
  0x1f   :  { %547 = vmatpush1.msra.mxu0 %v3081_v42  ;;  %2331 = vmatprep.subr.mxu1 %v4275_v4  ;;  %4354 = vst [vmem:[#allocation25_spill] sm:$0xff] %v3122_v49  ;;  %v92_v51 = vld [vmem:[%s4262_s0 + $0x4] sm:$0x3]  ;;  %4355 = vst [vmem:[#allocation26_spill] sm:$0xff] %v3135_v52  ;;  %v182_v54 = vld [vmem:[%s4263_s1 + $0x6] sm:$0x3] }
  0x20   :  { %548 = vmatprep.subr.mxu0 %v3087_v43  ;;  %2332 = vmatpush3.msra.mxu1 %v3092_v44  ;;  %v3144_v53 = vld [vmem:[%s4267_s5 + $0x40] sm:$0xff]  ;;  %v3157_v56 = vld [vmem:[%s4267_s5 + $0x28] sm:$0xff]  ;;  %v3166_v57 = vld [vmem:[%s4267_s5 + $0x10] sm:$0xff] }
  0x21   :  { %549 = vmatpush1.msra.mxu0 %v3098_v45  ;;  %2333 = vmatprep.subr.mxu1 %v4275_v4  ;;  %4356 = vst [vmem:[#allocation27_spill] sm:$0xff] %v3144_v53  ;;  %v93_v55 = vld [vmem:[%s4262_s0 + $0x6] sm:$0x3]  ;;  %4357 = vst [vmem:[#allocation28_spill] sm:$0xff] %v3157_v56  ;;  %v183_v58 = vld [vmem:[%s4263_s1 + $0x8] sm:$0x3] }
  0x22   :  { %583 = vmatmul.mubr.f32.vlgmr.msra.gmra.mxu0 %v4275_v4  ;;  %195 = vperm.xlu1 %2610, %v180_v46   ;;  %4358 = vst [vmem:[#allocation29_spill] sm:$0xff] %v3166_v57  ;;  %v94_v59 = vld [vmem:[%s4262_s0 + $0x8] sm:$0x3]  ;;  %v184_v60 = vld [vmem:[%s4263_s1 + $0xa] sm:$0x3]  ;;  %v141_v46 = vshrl.u32 %v140_v39, 7 }
  0x23   :  { %190 = vperm.xlu0 %2609, %v179_v47   ;;  %2334 = vmatpush3.msra.mxu1 %v3114_v48  ;;  %v95_v61 = vld [vmem:[%s4262_s0 + $0xa] sm:$0x3]  ;;  %v185_v62 = vld [vmem:[%s4263_s1 + $0xc] sm:$0x3]  ;;  %v186_v7 = vld [vmem:[%s4263_s1 + $0xe] sm:$0x3] }
  0x24   :  { %2335 = vmatprep.subr.mxu1 %v4275_v4  ;;  %688 = vmatprep.subr.mxu0 %v2838_v0  ;;  %v96_v63 = vld [vmem:[%s4262_s0 + $0xc] sm:$0x3]  ;;  %v97_v37 = vld [vmem:[%s4262_s0 + $0xe] sm:$0x3]  ;;  %v3261_v47 = vsub.s32 0, %v141_v46 }
  0x25   :  { %2336 = vmatpush3.msra.mxu1 %v3122_v49  ;;  %689 = vmatpush1.msra.mxu0 %v2843_v1 }
  0x26   :  { %2337 = vmatprep.subr.mxu1 %v4275_v4  ;;  %200 = vperm.xlu1 %2610, %v181_v50   ;;  %v3263_v50 = vsub.s32 1, %v141_v46 }
  0x27   :  { %111 = vperm.xlu0 %2609, %v92_v51   ;;  %2338 = vmatpush3.msra.mxu1 %v3135_v52  ;;  %v3265_v51 = vsub.s32 2, %v141_v46 }
  0x28   :  { %2339 = vmatprep.subr.mxu1 %v4275_v4  ;;  %690 = vmatprep.subr.mxu0 %v2848_v2 }
  0x29   :  { %2340 = vmatpush3.msra.mxu1 %v3144_v53  ;;  %691 = vmatpush1.msra.mxu0 %v2854_v3 }
  0x2a   :  { %2341 = vmatprep.subr.mxu1 %v4275_v4  ;;  %205 = vperm.xlu1 %2610, %v182_v54   ;;  %v98_v54 = vld [vmem:[%s4264_s2] sm:$0x7] }
  0x2b   :  { %116 = vperm.xlu0 %2609, %v93_v55   ;;  %2342 = vmatpush3.msra.mxu1 %v3157_v56 }
  0x2c   :  { %2343 = vmatprep.subr.mxu1 %v4275_v4  ;;  %692 = vmatprep.subr.mxu0 %v2861_v5 }
  0x2d   :  { %2344 = vmatpush3.msra.mxu1 %v3166_v57  ;;  %693 = vmatpush1.msra.mxu0 %v2868_v6 }
  0x2e   :  { %2346 = vmatmul.mubr.f32.vlgmr.msra.gmra.mxu1 %v4275_v4  ;;  %210 = vperm.xlu1 %2610, %v183_v58  }
  0x2f   :  { %121 = vperm.xlu0 %2609, %v94_v59   ;;  %2348 = vmatprep.subr.mxu1 %v4275_v4  ;;  %v187_v59 = vld [vmem:[%s4265_s3] sm:$0x7] }
  0x30   :  { %2349 = vmatpush3.msra.mxu1 %v2917_v15  ;;  %694 = vmatprep.subr.mxu0 %v2874_v8  ;;  %v3286_v39 = vrot.slane %v187_v59, %v3261_v47 }
  0x31   :  { %2350 = vmatprep.subr.mxu1 %v4275_v4  ;;  %695 = vmatpush1.msra.mxu0 %v2880_v9 }
  0x32   :  { %215 = vperm.xlu1 %2610, %v184_v60   ;;  %2351 = vmatpush3.msra.mxu1 %v2929_v17  ;;  %v3274_v60 = vrot.slane %v98_v54, %v3261_v47 }
  0x33   :  { %126 = vperm.xlu0 %2609, %v95_v61   ;;  %2352 = vmatprep.subr.mxu1 %v4275_v4  ;;  %v3277_v61 = vrot.slane %v98_v54, %v3263_v50 }
  0x34   :  { %2353 = vmatpush3.msra.mxu1 %v2941_v19  ;;  %696 = vmatprep.subr.mxu0 %v2888_v10 }
  0x35   :  { %2354 = vmatprep.subr.mxu1 %v4275_v4  ;;  %697 = vmatpush1.msra.mxu0 %v2894_v11 }
  0x36   :  { %220 = vperm.xlu1 %2610, %v185_v62   ;;  %2355 = vmatpush3.msra.mxu1 %v2960_v22  ;;  %v3280_v62 = vrot.slane %v98_v54, %v3265_v51 }
  0x37   :  { %131 = vperm.xlu0 %2609, %v96_v63   ;;  %2356 = vmatprep.subr.mxu1 %v4275_v4  ;;  %v292_v63 = vld [vmem:[%s4266_s4] sm:$0x7] }
  0x38   :  { %2357 = vmatpush3.msra.mxu1 %v2979_v25  ;;  %698 = vmatprep.subr.mxu0 %v2900_v12 }
  0x39   :  { %2358 = vmatprep.subr.mxu1 %v4275_v4  ;;  %699 = vmatpush1.msra.mxu0 %v2906_v13 }
  0x3a   :  { %225 = vperm.xlu1 %2610, %v186_v7   ;;  %2359 = vmatpush3.msra.mxu1 %v2998_v28  ;;  %v2768_v7 = vmov 1983009808  }
  0x3b   :  { %136 = vperm.xlu0 %2609, %v97_v37   ;;  %700 = vmatprep.subr.mxu0 %v2912_v14  ;;  %v359_v37 = vunpack.c.l.s4 %v2768_v7 }
  0x3c   :  { %2360 = vmatprep.subr.mxu1 %v4275_v4  ;;  %701 = vmatpush1.msra.mxu0 %v2923_v16 }
  0x3d   :  { %2361 = vmatpush3.msra.mxu1 %v3017_v31  ;;  %702 = vmatprep.subr.mxu0 %v2935_v18 }
  0x3e   :  { %2362 = vmatprep.subr.mxu1 %v4275_v4  ;;  %703 = vmatpush1.msra.mxu0 %v2947_v20 }
  0x3f   :  { %2363 = vmatpush3.msra.mxu1 %v3036_v34  ;;  %704 = vmatprep.subr.mxu0 %v2954_v21 }
  0x40   :  { %2364 = vmatprep.subr.mxu1 %v4275_v4  ;;  %705 = vmatpush1.msra.mxu0 %v2966_v23 }
  0x41   :  { %2365 = vmatpush3.msra.mxu1 %v3075_v41  ;;  %706 = vmatprep.subr.mxu0 %v2973_v24 }
  0x42   :  { %2366 = vmatprep.subr.mxu1 %v4275_v4  ;;  %707 = vmatpush1.msra.mxu0 %v2985_v26 }
  0x43   :  { %2367 = vmatpush3.msra.mxu1 %v3092_v44  ;;  %708 = vmatprep.subr.mxu0 %v2992_v27 }
  0x44   :  { %2368 = vmatprep.subr.mxu1 %v4275_v4  ;;  %709 = vmatpush1.msra.mxu0 %v3004_v29 }
  0x45   :  { %2369 = vmatpush3.msra.mxu1 %v3114_v48  ;;  %710 = vmatprep.subr.mxu0 %v3011_v30 }
  0x46   :  { %2370 = vmatprep.subr.mxu1 %v4275_v4  ;;  %711 = vmatpush1.msra.mxu0 %v3023_v32 }
  0x47   :  { %2371 = vmatpush3.msra.mxu1 %v3122_v49  ;;  %712 = vmatprep.subr.mxu0 %v3030_v33 }
  0x48   :  { %2372 = vmatprep.subr.mxu1 %v4275_v4  ;;  %713 = vmatpush1.msra.mxu0 %v3042_v35  ;;  %v3310_v35 = vrot.slane %v292_v63, %v3265_v51 }
  0x49   :  { %2373 = vmatpush3.msra.mxu1 %v3135_v52  ;;  %714 = vmatprep.subr.mxu0 %v3049_v36 }
  0x4a   :  { %2374 = vmatprep.subr.mxu1 %v4275_v4  ;;  %715 = vmatpush1.msra.mxu0 %v3059_v38 }
  0x4b   :  { %2375 = vmatpush3.msra.mxu1 %v3144_v53  ;;  %716 = vmatprep.subr.mxu0 %v3069_v40  ;;  %v360_v40 = vunpack.c.0.s8 %v359_v37 }
  0x4c   :  { %2376 = vmatprep.subr.mxu1 %v4275_v4  ;;  %717 = vmatpush1.msra.mxu0 %v3081_v42 }
  0x4d   :  { %2377 = vmatpush3.msra.mxu1 %v3157_v56  ;;  %718 = vmatprep.subr.mxu0 %v3087_v43  ;;  %v3298_v43 = vrot.slane %v292_v63, %v3261_v47  ;;  %v3315_v48 = vsub.s32 %v360_v40, %v141_v46 }
  0x4e   :  { %2378 = vmatprep.subr.mxu1 %v4275_v4  ;;  %719 = vmatpush1.msra.mxu0 %v3098_v45 }
  0x4f   :  { %752 = vmatprep.mubr.f32.mxu0 %v4275_v4  ;;  %2379 = vmatpush3.msra.mxu1 %v3166_v57 }
  0x50   :  { %2380 = vmatprep.mubr.msk.f32.mxu1 %vm2767_vm0, %v4275_v4  ;;  %859 = vmatprep.subr.mxu0 %v2838_v0  ;;  %v3292_v0 = vrot.slane %v187_v59, %v3265_v51 }
  0x51   :  { %2383 = vmatprep.subr.mxu1 %v4275_v4  ;;  %v3289_v4 = vrot.slane %v187_v59, %v3263_v50  ;;  %v3304_v59 = vrot.slane %v292_v63, %v3263_v50 }
  0x97   :  { %v107_v55 = vpop.permute.xlu1 %106 }
  0x98   :  { %v102_v58 = vpop.permute.xlu0 %101  ;;  %v158_v57 = vmul.f32 %v3274_v60, %v107_v55  ;;  %v159_v54 = vmul.f32 %v3277_v61, %v107_v55  ;;  %v160_v45 = vmul.f32 %v3280_v62, %v107_v55 }
  0x99   :  { %v155_v7 = vmul.f32 %v3274_v60, %v102_v58  ;;  %v156_v56 = vmul.f32 %v3277_v61, %v102_v58  ;;  %v157_v42 = vmul.f32 %v3280_v62, %v102_v58 }
  0x9d   :  { %v196_v53 = vpop.permute.xlu1 %195 }
  0x9e   :  { %v247_v38 = vmul.f32 %v3286_v39, %v196_v53  ;;  %v248_v36 = vmul.f32 %v3289_v4, %v196_v53  ;;  %v249_v55 = vmul.f32 %v3292_v0, %v196_v53  ;;  %v191_v52 = vpop.permute.xlu0 %190 }
  0x9f   :  { %v244_v33 = vmul.f32 %v3286_v39, %v191_v52  ;;  %v245_v49 = vmul.f32 %v3289_v4, %v191_v52  ;;  %v246_v58 = vmul.f32 %v3292_v0, %v191_v52 }
  0xa0   :  { %v271_v37 = vadd.f32 %v247_v38, %v158_v57  ;;  %v272_v32 = vadd.f32 %v248_v36, %v159_v54  ;;  %v273_v30 = vadd.f32 %v249_v55, %v160_v45 }
  0xa1   :  { %v268_v29 = vadd.f32 %v244_v33, %v155_v7  ;;  %v269_v27 = vadd.f32 %v245_v49, %v156_v56  ;;  %v270_v44 = vadd.f32 %v246_v58, %v157_v42  ;;  %v201_v26 = vpop.permute.xlu1 %200 }
  0xa2   :  { %v312_v53 = vadd.f32 %v3298_v43, %v271_v37  ;;  %v313_v63 = vadd.f32 %v3304_v59, %v272_v32  ;;  %v314_v24 = vadd.f32 %v3310_v35, %v273_v30  ;;  %v250_v41 = vmul.f32 %v3286_v39, %v201_v26  ;;  %v112_v23 = vpop.permute.xlu0 %111 }
  0xa3   :  { %v309_v52 = vadd.f32 %v3298_v43, %v268_v29  ;;  %v310_v36 = vadd.f32 %v3304_v59, %v269_v27  ;;  %v311_v38 = vadd.f32 %v3310_v35, %v270_v44  ;;  %v251_v33 = vmul.f32 %v3289_v4, %v201_v26 }
  0xa4   :  { %v373_v40 = vcombine.low %v312_v53, %v313_v63  ;;  %v387_v42 = vrot.slane %v314_v24, %v3315_v48  ;;  %v252_v45 = vmul.f32 %v3292_v0, %v201_v26  ;;  %v161_v32 = vmul.f32 %v3274_v60, %v112_v23 }
  0xa5   :  { %v357_v49 = vcombine.low %v309_v52, %v310_v36  ;;  %v371_v30 = vrot.slane %v311_v38, %v3315_v48  ;;  %v162_v56 = vmul.f32 %v3277_v61, %v112_v23  ;;  %v163_v29 = vmul.f32 %v3280_v62, %v112_v23  ;;  %v206_v57 = vpop.permute.xlu1 %205 }
  0xa6   :  { %v380_v27 = vrot.slane %v373_v40, %v3315_v48  ;;  %v274_v44 = vadd.f32 %v250_v41, %v161_v32  ;;  %v253_v46 = vmul.f32 %v3286_v39, %v206_v57  ;;  %v254_v54 = vmul.f32 %v3289_v4, %v206_v57  ;;  %v117_v24 = vpop.permute.xlu0 %116 }
  0xa7   :  { %v364_v26 = vrot.slane %v357_v49, %v3315_v48  ;;  %v275_v7 = vadd.f32 %v251_v33, %v162_v56  ;;  %v276_v55 = vadd.f32 %v252_v45, %v163_v29  ;;  %v255_v58 = vmul.f32 %v3292_v0, %v206_v57 }
  0xa8   :  { %v388_v37 = vcombine.low %v380_v27, %v387_v42  ;;  %v315_v53 = vadd.f32 %v3298_v43, %v274_v44  ;;  %v164_v23 = vmul.f32 %v3274_v60, %v117_v24  ;;  %v165_v63 = vmul.f32 %v3277_v61, %v117_v24 }
  0xa9   :  { %v372_v52 = vcombine.low %v364_v26, %v371_v30  ;;  %v316_v41 = vadd.f32 %v3304_v59, %v275_v7  ;;  %v317_v36 = vadd.f32 %v3310_v35, %v276_v55  ;;  %v166_v38 = vmul.f32 %v3280_v62, %v117_v24  ;;  %v211_v40 = vpop.permute.xlu1 %210 }
  0xaa   :  { %494 = vst [vmem:[#allocation2 + $0x6] sm:$0x3f] %v388_v37  ;;  %v277_v33 = vadd.f32 %v253_v46, %v164_v23  ;;  %v278_v45 = vadd.f32 %v254_v54, %v165_v63  ;;  %v256_v32 = vmul.f32 %v3286_v39, %v211_v40  ;;  %v257_v42 = vmul.f32 %v3289_v4, %v211_v40  ;;  %v122_v49 = vpop.permute.xlu0 %121 }
  0xab   :  { %493 = vst [vmem:[#allocation2] sm:$0x3f] %v372_v52  ;;  %v389_v56 = vcombine.low %v315_v53, %v316_v41  ;;  %v403_v29 = vrot.slane %v317_v36, %v3315_v48  ;;  %v279_v30 = vadd.f32 %v255_v58, %v166_v38  ;;  %v258_v57 = vmul.f32 %v3292_v0, %v211_v40 }
  0xac   :  { %v318_v27 = vadd.f32 %v3298_v43, %v277_v33  ;;  %v319_v44 = vadd.f32 %v3304_v59, %v278_v45  ;;  %v167_v24 = vmul.f32 %v3274_v60, %v122_v49  ;;  %v168_v46 = vmul.f32 %v3277_v61, %v122_v49 }
  0xad   :  { %v396_v54 = vrot.slane %v389_v56, %v3315_v48  ;;  %v320_v26 = vadd.f32 %v3310_v35, %v279_v30  ;;  %v169_v7 = vmul.f32 %v3280_v62, %v122_v49  ;;  %v216_v55 = vpop.permute.xlu1 %215 }
  0xae   :  { %v405_v37 = vcombine.low %v318_v27, %v319_v44  ;;  %v280_v53 = vadd.f32 %v256_v32, %v167_v24  ;;  %v281_v58 = vadd.f32 %v257_v42, %v168_v46  ;;  %v259_v23 = vmul.f32 %v3286_v39, %v216_v55  ;;  %v127_v63 = vpop.permute.xlu0 %126 }
  0xaf   :  { %v404_v52 = vcombine.low %v396_v54, %v403_v29  ;;  %v419_v41 = vrot.slane %v320_v26, %v3315_v48  ;;  %v282_v36 = vadd.f32 %v258_v57, %v169_v7  ;;  %v260_v38 = vmul.f32 %v3289_v4, %v216_v55 }
  0xb0   :  { %v412_v40 = vrot.slane %v405_v37, %v3315_v48  ;;  %v321_v33 = vadd.f32 %v3298_v43, %v280_v53  ;;  %v322_v45 = vadd.f32 %v3304_v59, %v281_v58  ;;  %v261_v49 = vmul.f32 %v3292_v0, %v216_v55 }
  0xb1   :  { %495 = vst [vmem:[#allocation2 + $0xc] sm:$0x3f] %v404_v52  ;;  %v323_v32 = vadd.f32 %v3310_v35, %v282_v36  ;;  %v170_v42 = vmul.f32 %v3274_v60, %v127_v63  ;;  %v171_v56 = vmul.f32 %v3277_v61, %v127_v63  ;;  %v172_v29 = vmul.f32 %v3280_v62, %v127_v63  ;;  %v221_v30 = vpop.permute.xlu1 %220 }
  0xb2   :  { %v420_v57 = vcombine.low %v412_v40, %v419_v41  ;;  %v421_v27 = vcombine.low %v321_v33, %v322_v45  ;;  %v262_v44 = vmul.f32 %v3286_v39, %v221_v30  ;;  %v263_v24 = vmul.f32 %v3289_v4, %v221_v30  ;;  %v132_v46 = vpop.permute.xlu0 %131 }
  0xb3   :  { %v435_v54 = vrot.slane %v323_v32, %v3315_v48  ;;  %v283_v26 = vadd.f32 %v259_v23, %v170_v42  ;;  %v284_v7 = vadd.f32 %v260_v38, %v171_v56  ;;  %v285_v55 = vadd.f32 %v261_v49, %v172_v29 }
  0xb4   :  { %496 = vst [vmem:[#allocation2 + $0x12] sm:$0x3f] %v420_v57  ;;  %v428_v37 = vrot.slane %v421_v27, %v3315_v48  ;;  %v264_v53 = vmul.f32 %v3292_v0, %v221_v30  ;;  %v173_v58 = vmul.f32 %v3274_v60, %v132_v46  ;;  %v174_v63 = vmul.f32 %v3277_v61, %v132_v46 }
  0xb5   :  { %v324_v52 = vadd.f32 %v3298_v43, %v283_v26  ;;  %v325_v41 = vadd.f32 %v3304_v59, %v284_v7  ;;  %v326_v36 = vadd.f32 %v3310_v35, %v285_v55  ;;  %v175_v40 = vmul.f32 %v3280_v62, %v132_v46  ;;  %v226_v23 = vpop.permute.xlu1 %225 }
  0xb6   :  { %v436_v38 = vcombine.low %v428_v37, %v435_v54  ;;  %v286_v33 = vadd.f32 %v262_v44, %v173_v58  ;;  %v287_v45 = vadd.f32 %v263_v24, %v174_v63  ;;  %v265_v49 = vmul.f32 %v3286_v39, %v226_v23  ;;  %v137_v32 = vpop.permute.xlu0 %136 }
  0xb7   :  { %v437_v42 = vcombine.low %v324_v52, %v325_v41  ;;  %v451_v56 = vrot.slane %v326_v36, %v3315_v48  ;;  %v288_v29 = vadd.f32 %v264_v53, %v175_v40  ;;  %v266_v30 = vmul.f32 %v3289_v4, %v226_v23 }
  0xb8   :  { %497 = vst [vmem:[#allocation2 + $0x18] sm:$0x3f] %v436_v38  ;;  %v327_v57 = vadd.f32 %v3298_v43, %v286_v33  ;;  %v328_v27 = vadd.f32 %v3304_v59, %v287_v45  ;;  %v267_v46 = vmul.f32 %v3292_v0, %v226_v23  ;;  %v176_v54 = vmul.f32 %v3274_v60, %v137_v32  ;;  %v89_v23 = vld [vmem:[%s4268_s6] sm:$0x7] }
  0xb9   :  { %v444_v44 = vrot.slane %v437_v42, %v3315_v48  ;;  %v329_v39 = vadd.f32 %v3310_v35, %v288_v29  ;;  %v177_v24 = vmul.f32 %v3277_v61, %v137_v32  ;;  %v178_v26 = vmul.f32 %v3280_v62, %v137_v32  ;;  %v501_v33 = vld [vmem:[#allocation2] sm:$0x3f] }
  0xba   :  { %v453_v7 = vcombine.low %v327_v57, %v328_v27  ;;  %v289_v55 = vadd.f32 %v265_v49, %v176_v54  ;;  %v667_v42 = vrot.slane %v501_v33, 2 }
  0xbb   :  { %v452_v4 = vcombine.low %v444_v44, %v451_v56  ;;  %v467_v37 = vrot.slane %v329_v39, %v3315_v48  ;;  %v290_v53 = vadd.f32 %v266_v30, %v177_v24  ;;  %v291_v58 = vadd.f32 %v267_v46, %v178_v26 }
  0xbc   :  { %v460_v63 = vrot.slane %v453_v7, %v3315_v48  ;;  %v330_v0 = vadd.f32 %v3298_v43, %v289_v55  ;;  %v3397_v43 = vrot.slane %v89_v23, %v3261_v47  ;;  %v3405_v46 = vrot.slane %v89_v23, %v3265_v51 }
  0xbd   :  { %498 = vst [vmem:[#allocation2 + $0x1e] sm:$0x3f] %v452_v4  ;;  %v331_v60 = vadd.f32 %v3304_v59, %v290_v53  ;;  %v332_v52 = vadd.f32 %v3310_v35, %v291_v58  ;;  %v3401_v35 = vrot.slane %v89_v23, %v3263_v50  ;;  %v677_v26 = vrot.slane %v501_v33, 4 }
  0xbe   :  { %v468_v41 = vcombine.low %v460_v63, %v467_v37  ;;  %4359 = vst [vmem:[#allocation30_spill] sm:$0xff] %v3397_v43  ;;  %v4361_v51 = vmov 0.0  }
  0xbf   :  { %v469_v61 = vcombine.low %v330_v0, %v331_v60  ;;  %v483_v62 = vrot.slane %v332_v52, %v3315_v48  ;;  %v4378_v0 = vld [vmem:[#allocation27_spill] sm:$0xff]  ;;  %v4379_v60 = vld [vmem:[#allocation18_spill] sm:$0xff]  ;;  %v4380_v52 = vld [vmem:[#allocation20_spill] sm:$0xff] }
  0xc0   :  { %499 = vst [vmem:[#allocation2 + $0x24] sm:$0x3f] %v468_v41  ;;  %v4381_v41 = vld [vmem:[#allocation28_spill] sm:$0xff] }
  0xc1   :  { %v476_v36 = vrot.slane %v469_v61, %v3315_v48  ;;  %v4382_v61 = vld [vmem:[#allocation21_spill] sm:$0xff] }
  0xc3   :  { %v484_v40 = vcombine.low %v476_v36, %v483_v62  ;;  %v4383_v62 = vld [vmem:[#allocation23_spill] sm:$0xff]  ;;  %v4384_v36 = vld [vmem:[#allocation29_spill] sm:$0xff] }
  0xc5   :  { %500 = vst [vmem:[#allocation2 + $0x2a] sm:$0x3f] %v484_v40  ;;  %v4385_v40 = vld [vmem:[#allocation6_spill] sm:$0xff] }
  0xe2   :  { %v584_v38 = vpop.f32.mrf.mxu0 }
  0xe3   :  { %v585_v59 = vadd.f32 %v584_v38, %v3397_v43 }
  0xe4   :  { %v586_v45 = vpop.f32.mrf.mxu0 }
  0xe5   :  { %v659_v49 = vadd.f32 %v585_v59, %v501_v33  ;;  %v587_v48 = vadd.f32 %v586_v45, %v3401_v35  ;;  %v687_v33 = vld [vmem:[#allocation2 + $0x6] sm:$0x3f] }
  0xe7   :  { %v2111_v32 = vmul.f32 -1.442695, %v659_v49  ;;  %v669_v56 = vadd.f32 %v667_v42, %v587_v48 }
  0xe9   :  { %2611 = vpow2.f32 %v2111_v32  ;;  %v2112_v30 = vmul.f32 -1.442695, %v669_v56  ;;  %v837_v56 = vrot.slane %v687_v33, 2 }
  0xeb   :  { %2613 = vpow2.f32 %v2112_v30 }
  0xee   :  { %v655_v29 = vpop.f32.mrf.mxu1 }
  0xef   :  { %v656_v44 = vadd.f32 %v655_v29, %v3405_v46 }
  0xf0   :  { %v2347_v57 = vpop.f32.mrf.mxu1 }
  0xf6   :  { %v2612_v47 = vpop.eup %2611 }
  0xf7   :  { %v663_v27 = vadd.f32 1.0, %v2612_v47 }
  0xf8   :  { %v2614_v50 = vpop.eup %2613 }
  0xf9   :  { %2615 = vrcp.f32 %v663_v27  ;;  %v673_v54 = vadd.f32 1.0, %v2614_v50 }
  0xfb   :  { %2617 = vrcp.f32 %v673_v54 }
 0x106   :  { %v2616_v39 = vpop.eup %2615 }
 0x107   :  { %v676_v24 = vmul.f32 %v2616_v39, %v656_v44 }
 0x108   :  { %v2618_v55 = vpop.eup %2617 }
 0x109   :  { %v679_v7 = vadd.f32 %v677_v26, %v676_v24  ;;  %v681_v4 = vsub.f32 1.0, %v2618_v55  ;;  %v683_v58 = vmul.f32 0.0, %v2618_v55  ;;  %v847_v24 = vrot.slane %v687_v33, 4 }
 0x10b   :  { %2619 = vtanh.f32 %v679_v7 }
 0x118   :  { %v2620_v37 = vpop.eup %2619 }
 0x119   :  { %v682_v53 = vmul.f32 %v2620_v37, %v681_v4 }
 0x11b   :  { %v3408_v63 = vadd.f32 %v683_v58, %v682_v53 }
 0x11d   :  { %4360 = vst [vmem:[#allocation31_spill] sm:$0xff] %v3408_v63  ;;  %685 = vst [vmem:[%s4273_s11] sm:$0x3] %v3408_v63  ;;  %753 = vmatmul.mubr.f32.vlgmr.msra.gmra.mxu0 %v3408_v63  ;;  %2381 = vmatmul.mubr.f32.vlgmr.msra.gmra.mxu1 %v3408_v63 }
 0x11e   :  { %860 = vmatpush1.msra.mxu0 %v2843_v1  ;;  %2384 = vmatpush3.msra.mxu1 %v2917_v15  ;;  %v4362_v1 = vld [vmem:[#allocation7_spill] sm:$0xff] }
 0x11f   :  { %861 = vmatprep.subr.mxu0 %v2848_v2  ;;  %2385 = vmatprep.subr.mxu1 %v4361_v51  ;;  %v4363_v2 = vld [vmem:[#allocation19_spill] sm:$0xff] }
 0x120   :  { %862 = vmatpush1.msra.mxu0 %v2854_v3  ;;  %2386 = vmatpush3.msra.mxu1 %v2929_v17  ;;  %v4364_v3 = vld [vmem:[#allocation8_spill] sm:$0xff] }
 0x121   :  { %863 = vmatprep.subr.mxu0 %v2861_v5  ;;  %2387 = vmatprep.subr.mxu1 %v4361_v51  ;;  %v4365_v5 = vld [vmem:[#allocation9_spill] sm:$0xff] }
 0x122   :  { %864 = vmatpush1.msra.mxu0 %v2868_v6  ;;  %2388 = vmatpush3.msra.mxu1 %v2941_v19  ;;  %v4366_v6 = vld [vmem:[#allocation22_spill] sm:$0xff] }
 0x123   :  { %865 = vmatprep.subr.mxu0 %v2874_v8  ;;  %2389 = vmatprep.subr.mxu1 %v4361_v51  ;;  %v4367_v8 = vld [vmem:[#allocation10_spill] sm:$0xff] }
 0x124   :  { %866 = vmatpush1.msra.mxu0 %v2880_v9  ;;  %2390 = vmatpush3.msra.mxu1 %v2960_v22  ;;  %v4368_v9 = vld [vmem:[#allocation11_spill] sm:$0xff] }
 0x125   :  { %867 = vmatprep.subr.mxu0 %v2888_v10  ;;  %2391 = vmatprep.subr.mxu1 %v4361_v51  ;;  %v4369_v10 = vld [vmem:[#allocation24_spill] sm:$0xff] }
 0x126   :  { %868 = vmatpush1.msra.mxu0 %v2894_v11  ;;  %2392 = vmatpush3.msra.mxu1 %v2979_v25  ;;  %v4370_v11 = vld [vmem:[#allocation12_spill] sm:$0xff] }
 0x127   :  { %869 = vmatprep.subr.mxu0 %v2900_v12  ;;  %2393 = vmatprep.subr.mxu1 %v4361_v51  ;;  %v4371_v12 = vld [vmem:[#allocation13_spill] sm:$0xff] }
 0x128   :  { %870 = vmatpush1.msra.mxu0 %v2906_v13  ;;  %2394 = vmatpush3.msra.mxu1 %v2998_v28  ;;  %v4372_v13 = vld [vmem:[#allocation25_spill] sm:$0xff] }
 0x129   :  { %871 = vmatprep.subr.mxu0 %v2912_v14  ;;  %2395 = vmatprep.subr.mxu1 %v4361_v51  ;;  %v4373_v14 = vld [vmem:[#allocation14_spill] sm:$0xff] }
 0x12a   :  { %872 = vmatpush1.msra.mxu0 %v2923_v16  ;;  %2396 = vmatpush3.msra.mxu1 %v3017_v31  ;;  %v4374_v16 = vld [vmem:[#allocation15_spill] sm:$0xff] }
 0x12b   :  { %873 = vmatprep.subr.mxu0 %v2935_v18  ;;  %2397 = vmatprep.subr.mxu1 %v4361_v51  ;;  %v4375_v18 = vld [vmem:[#allocation26_spill] sm:$0xff] }
 0x12c   :  { %874 = vmatpush1.msra.mxu0 %v2947_v20  ;;  %2398 = vmatpush3.msra.mxu1 %v3036_v34  ;;  %v4376_v20 = vld [vmem:[#allocation16_spill] sm:$0xff] }
 0x12d   :  { %875 = vmatprep.subr.mxu0 %v2954_v21  ;;  %2399 = vmatprep.subr.mxu1 %v4361_v51  ;;  %v4377_v21 = vld [vmem:[#allocation17_spill] sm:$0xff] }
 0x12e   :  { %876 = vmatpush1.msra.mxu0 %v4362_v1  ;;  %2400 = vmatpush3.msra.mxu1 %v4363_v2  ;;  %v3498_v1 = vld [vmem:[%s4267_s5 + $0x168] sm:$0xff] }
 0x12f   :  { %877 = vmatprep.subr.mxu0 %v4364_v3  ;;  %2401 = vmatprep.subr.mxu1 %v4361_v51  ;;  %v3505_v3 = vld [vmem:[%s4267_s5 + $0x158] sm:$0xff] }
 0x130   :  { %878 = vmatpush1.msra.mxu0 %v4365_v5  ;;  %2402 = vmatpush3.msra.mxu1 %v4366_v6  ;;  %v3512_v5 = vld [vmem:[%s4267_s5 + $0x150] sm:$0xff] }
 0x131   :  { %879 = vmatprep.subr.mxu0 %v4367_v8  ;;  %2403 = vmatprep.subr.mxu1 %v4361_v51  ;;  %v3526_v8 = vld [vmem:[%s4267_s5 + $0x138] sm:$0xff] }
 0x132   :  { %880 = vmatpush1.msra.mxu0 %v4368_v9  ;;  %2404 = vmatpush3.msra.mxu1 %v4369_v10  ;;  %v3540_v9 = vld [vmem:[%s4267_s5 + $0x120] sm:$0xff] }
 0x133   :  { %881 = vmatprep.subr.mxu0 %v4370_v11  ;;  %2405 = vmatprep.subr.mxu1 %v4361_v51  ;;  %v3554_v11 = vld [vmem:[%s4267_s5 + $0x108] sm:$0xff] }
 0x134   :  { %882 = vmatpush1.msra.mxu0 %v4371_v12  ;;  %2406 = vmatpush3.msra.mxu1 %v4372_v13 }
 0x135   :  { %883 = vmatprep.subr.mxu0 %v4373_v14  ;;  %2407 = vmatprep.subr.mxu1 %v4361_v51 }
 0x136   :  { %884 = vmatpush1.msra.mxu0 %v4374_v16  ;;  %2408 = vmatpush3.msra.mxu1 %v4375_v18 }
 0x137   :  { %885 = vmatprep.subr.mxu0 %v4376_v20  ;;  %2409 = vmatprep.subr.mxu1 %v4361_v51 }
 0x138   :  { %886 = vmatpush1.msra.mxu0 %v4377_v21  ;;  %2410 = vmatpush3.msra.mxu1 %v4378_v0 }
 0x139   :  { %887 = vmatprep.subr.mxu0 %v4379_v60  ;;  %2411 = vmatprep.subr.mxu1 %v4361_v51 }
 0x13a   :  { %888 = vmatpush1.msra.mxu0 %v4380_v52  ;;  %2412 = vmatpush3.msra.mxu1 %v4381_v41 }
 0x13b   :  { %889 = vmatprep.subr.mxu0 %v4382_v61  ;;  %2413 = vmatprep.subr.mxu1 %v4361_v51 }
 0x13c   :  { %890 = vmatpush1.msra.mxu0 %v4383_v62  ;;  %923 = vmatprep.mubr.f32.mxu0 %v4361_v51 }
 0x13d   :  { %2414 = vmatpush3.msra.mxu1 %v4384_v36  ;;  %2415 = vmatprep.mubr.msk.f32.mxu1 %vm2767_vm0, %v4361_v51 }
 0x13e   :  { %1030 = vmatprep.subr.mxu0 %v4385_v40  ;;  %2418 = vmatprep.subr.mxu1 %v4361_v51  ;;  %v3568_v40 = vld [vmem:[%s4267_s5 + $0xf0] sm:$0xff] }
 0x1dd   :  { %v754_v23 = vpop.f32.mrf.mxu0  ;;  %v825_v38 = vpop.f32.mrf.mxu1 }
 0x1de   :  { %v755_v59 = vadd.f32 %v754_v23, %v3397_v43  ;;  %v826_v54 = vadd.f32 %v825_v38, %v3405_v46  ;;  %v3582_v23 = vld [vmem:[%s4267_s5 + $0xd8] sm:$0xff]  ;;  %v3596_v38 = vld [vmem:[%s4267_s5 + $0xc0] sm:$0xff] }
 0x1df   :  { %v756_v45 = vpop.f32.mrf.mxu0  ;;  %v2382_v49 = vpop.f32.mrf.mxu1 }
 0x1e0   :  { %v829_v32 = vadd.f32 %v755_v59, %v687_v33  ;;  %v757_v42 = vadd.f32 %v756_v45, %v3401_v35  ;;  %v3610_v59 = vld [vmem:[%s4267_s5 + $0xa8] sm:$0xff]  ;;  %v3624_v33 = vld [vmem:[%s4267_s5 + $0x90] sm:$0xff]  ;;  %v3638_v45 = vld [vmem:[%s4267_s5 + $0x78] sm:$0xff] }
 0x1e2   :  { %v2113_v48 = vmul.f32 -1.442695, %v829_v32  ;;  %v839_v29 = vadd.f32 %v837_v56, %v757_v42 }
 0x1e4   :  { %2621 = vpow2.f32 %v2113_v48  ;;  %v2114_v30 = vmul.f32 -1.442695, %v839_v29 }
 0x1e6   :  { %2623 = vpow2.f32 %v2114_v30 }
 0x1f1   :  { %v2622_v57 = vpop.eup %2621 }
 0x1f2   :  { %v833_v47 = vadd.f32 1.0, %v2622_v57 }
 0x1f3   :  { %v2624_v27 = vpop.eup %2623 }
 0x1f4   :  { %2625 = vrcp.f32 %v833_v47  ;;  %v843_v50 = vadd.f32 1.0, %v2624_v27 }
 0x1f6   :  { %2627 = vrcp.f32 %v843_v50 }
 0x201   :  { %v2626_v44 = vpop.eup %2625 }
 0x202   :  { %v846_v39 = vmul.f32 %v2626_v44, %v826_v54 }
 0x203   :  { %v2628_v7 = vpop.eup %2627 }
 0x204   :  { %v849_v26 = vadd.f32 %v847_v24, %v846_v39  ;;  %v851_v55 = vsub.f32 1.0, %v2628_v7  ;;  %v853_v53 = vmul.f32 %v2628_v7, %v3408_v63  ;;  %v3693_v39 = vld [vmem:[%s4267_s5 + $0x178] sm:$0xff]  ;;  %v3702_v24 = vld [vmem:[%s4267_s5 + $0x160] sm:$0xff]  ;;  %v3720_v7 = vld [vmem:[%s4267_s5 + $0x130] sm:$0xff] }
 0x206   :  { %2629 = vtanh.f32 %v849_v26  ;;  %v3711_v26 = vld [vmem:[%s4267_s5 + $0x148] sm:$0xff] }
 0x213   :  { %v2630_v4 = vpop.eup %2629 }
 0x214   :  { %v852_v37 = vmul.f32 %v2630_v4, %v851_v55  ;;  %v3729_v55 = vld [vmem:[%s4267_s5 + $0x118] sm:$0xff]  ;;  %v3738_v4 = vld [vmem:[%s4267_s5 + $0x100] sm:$0xff] }
 0x216   :  { %v3487_v58 = vadd.f32 %v853_v53, %v852_v37  ;;  %v3747_v37 = vld [vmem:[%s4267_s5 + $0xe8] sm:$0xff]  ;;  %v3756_v53 = vld [vmem:[%s4267_s5 + $0xd0] sm:$0xff] }
 0x218   :  { %2115 = vst [vmem:[%s4273_s11 + $0x2] sm:$0x3] %v3487_v58  ;;  %924 = vmatmul.mubr.f32.vlgmr.msra.gmra.mxu0 %v3487_v58  ;;  %2416 = vmatmul.mubr.f32.vlgmr.msra.gmra.mxu1 %v3487_v58 }
 0x219   :  { %1031 = vmatpush1.msra.mxu0 %v3498_v1  ;;  %2419 = vmatpush3.msra.mxu1 %v2917_v15  ;;  %v3519_v15 = vld [vmem:[%s4267_s5 + $0x140] sm:$0xff] }
 0x21a   :  { %1032 = vmatprep.subr.mxu0 %v3505_v3  ;;  %2420 = vmatprep.subr.mxu1 %v4361_v51 }
 0x21b   :  { %1033 = vmatpush1.msra.mxu0 %v3512_v5  ;;  %2421 = vmatpush3.msra.mxu1 %v2929_v17  ;;  %v3533_v17 = vld [vmem:[%s4267_s5 + $0x128] sm:$0xff] }
 0x21c   :  { %1034 = vmatprep.subr.mxu0 %v3519_v15  ;;  %2422 = vmatprep.subr.mxu1 %v4361_v51 }
 0x21d   :  { %1035 = vmatpush1.msra.mxu0 %v3526_v8  ;;  %2423 = vmatpush3.msra.mxu1 %v2941_v19  ;;  %v3547_v19 = vld [vmem:[%s4267_s5 + $0x110] sm:$0xff] }
 0x21e   :  { %1036 = vmatprep.subr.mxu0 %v3533_v17  ;;  %2424 = vmatprep.subr.mxu1 %v4361_v51 }
 0x21f   :  { %1037 = vmatpush1.msra.mxu0 %v3540_v9  ;;  %2425 = vmatpush3.msra.mxu1 %v2960_v22  ;;  %v3561_v22 = vld [vmem:[%s4267_s5 + $0xf8] sm:$0xff] }
 0x220   :  { %1038 = vmatprep.subr.mxu0 %v3547_v19  ;;  %2426 = vmatprep.subr.mxu1 %v4361_v51 }
 0x221   :  { %1039 = vmatpush1.msra.mxu0 %v3554_v11  ;;  %2427 = vmatpush3.msra.mxu1 %v2979_v25  ;;  %v3575_v25 = vld [vmem:[%s4267_s5 + $0xe0] sm:$0xff] }
 0x222   :  { %1040 = vmatprep.subr.mxu0 %v3561_v22  ;;  %2428 = vmatprep.subr.mxu1 %v4361_v51 }
 0x223   :  { %1041 = vmatpush1.msra.mxu0 %v3568_v40  ;;  %2429 = vmatpush3.msra.mxu1 %v2998_v28  ;;  %v3589_v28 = vld [vmem:[%s4267_s5 + $0xc8] sm:$0xff] }
 0x224   :  { %1042 = vmatprep.subr.mxu0 %v3575_v25  ;;  %2430 = vmatprep.subr.mxu1 %v4361_v51 }
 0x225   :  { %1043 = vmatpush1.msra.mxu0 %v3582_v23  ;;  %2431 = vmatpush3.msra.mxu1 %v3017_v31  ;;  %v3603_v31 = vld [vmem:[%s4267_s5 + $0xb0] sm:$0xff] }
 0x226   :  { %1044 = vmatprep.subr.mxu0 %v3589_v28  ;;  %2432 = vmatprep.subr.mxu1 %v4361_v51 }
 0x227   :  { %1045 = vmatpush1.msra.mxu0 %v3596_v38  ;;  %2433 = vmatpush3.msra.mxu1 %v3036_v34  ;;  %v3617_v34 = vld [vmem:[%s4267_s5 + $0x98] sm:$0xff] }
 0x228   :  { %1046 = vmatprep.subr.mxu0 %v3603_v31  ;;  %2434 = vmatprep.subr.mxu1 %v4361_v51 }
 0x229   :  { %1047 = vmatpush1.msra.mxu0 %v3610_v59  ;;  %2435 = vmatpush3.msra.mxu1 %v4363_v2  ;;  %v3631_v2 = vld [vmem:[%s4267_s5 + $0x80] sm:$0xff] }
 0x22a   :  { %1048 = vmatprep.subr.mxu0 %v3617_v34  ;;  %2436 = vmatprep.subr.mxu1 %v4361_v51 }
 0x22b   :  { %1049 = vmatpush1.msra.mxu0 %v3624_v33  ;;  %2437 = vmatpush3.msra.mxu1 %v4366_v6  ;;  %v3645_v6 = vld [vmem:[%s4267_s5 + $0x68] sm:$0xff] }
 0x22c   :  { %1050 = vmatprep.subr.mxu0 %v3631_v2  ;;  %2438 = vmatprep.subr.mxu1 %v4361_v51 }
 0x22d   :  { %1051 = vmatpush1.msra.mxu0 %v3638_v45  ;;  %2439 = vmatpush3.msra.mxu1 %v4369_v10  ;;  %v3673_v10 = vld [vmem:[%s4267_s5 + $0x170] sm:$0xff] }
 0x22e   :  { %1052 = vmatprep.subr.mxu0 %v3645_v6  ;;  %2440 = vmatprep.subr.mxu1 %v4361_v51  ;;  %4386 = vst [vmem:[#allocation7_spill] sm:$0xff] %v3673_v10 }
 0x22f   :  { %1053 = vmatpush1.msra.mxu0 %v4371_v12  ;;  %2441 = vmatpush3.msra.mxu1 %v4372_v13 }
 0x230   :  { %1054 = vmatprep.subr.mxu0 %v4373_v14  ;;  %2442 = vmatprep.subr.mxu1 %v4361_v51 }
 0x231   :  { %1055 = vmatpush1.msra.mxu0 %v4374_v16  ;;  %2443 = vmatpush3.msra.mxu1 %v4375_v18  ;;  %v858_v16 = vld [vmem:[#allocation2 + $0xc] sm:$0x3f] }
 0x232   :  { %1056 = vmatprep.subr.mxu0 %v4376_v20  ;;  %2444 = vmatprep.subr.mxu1 %v4361_v51  ;;  %v1018_v29 = vrot.slane %v858_v16, 4 }
 0x233   :  { %1057 = vmatpush1.msra.mxu0 %v4377_v21  ;;  %2445 = vmatpush3.msra.mxu1 %v4378_v0 }
 0x234   :  { %1058 = vmatprep.subr.mxu0 %v4379_v60  ;;  %2446 = vmatprep.subr.mxu1 %v4361_v51 }
 0x235   :  { %1059 = vmatpush1.msra.mxu0 %v4380_v52  ;;  %2447 = vmatpush3.msra.mxu1 %v4381_v41  ;;  %v1008_v52 = vrot.slane %v858_v16, 2 }
 0x236   :  { %1060 = vmatprep.subr.mxu0 %v4382_v61  ;;  %2448 = vmatprep.subr.mxu1 %v4361_v51 }
 0x237   :  { %1061 = vmatpush1.msra.mxu0 %v4383_v62  ;;  %1094 = vmatprep.mubr.f32.mxu0 %v4361_v51 }
 0x238   :  { %2449 = vmatpush3.msra.mxu1 %v4384_v36  ;;  %2450 = vmatprep.mubr.msk.f32.mxu1 %vm2767_vm0, %v4361_v51 }
 0x239   :  { %1201 = vmatprep.subr.mxu0 %v3673_v10  ;;  %2453 = vmatprep.subr.mxu1 %v4361_v51 }
 0x2d8   :  { %v925_v12 = vpop.f32.mrf.mxu0  ;;  %v996_v13 = vpop.f32.mrf.mxu1 }
 0x2d9   :  { %v926_v14 = vadd.f32 %v925_v12, %v3397_v43  ;;  %v997_v48 = vadd.f32 %v996_v13, %v3405_v46  ;;  %v3774_v12 = vld [vmem:[%s4267_s5 + $0xa0] sm:$0xff]  ;;  %v3783_v13 = vld [vmem:[%s4267_s5 + $0x88] sm:$0xff] }
 0x2da   :  { %v927_v18 = vpop.f32.mrf.mxu0  ;;  %v2417_v20 = vpop.f32.mrf.mxu1 }
 0x2db   :  { %v1000_v21 = vadd.f32 %v926_v14, %v858_v16  ;;  %v928_v60 = vadd.f32 %v927_v18, %v3401_v35  ;;  %v3791_v14 = vld [vmem:[%s4267_s5 + $0x60] sm:$0xff]  ;;  %v3797_v16 = vld [vmem:[%s4267_s5 + $0x70] sm:$0xff]  ;;  %v3810_v20 = vld [vmem:[%s4267_s5 + $0x48] sm:$0xff] }
 0x2dc   :  { %v3803_v18 = vld [vmem:[%s4267_s5 + $0x50] sm:$0xff] }
 0x2dd   :  { %v2116_v0 = vmul.f32 -1.442695, %v1000_v21  ;;  %v1010_v41 = vadd.f32 %v1008_v52, %v928_v60  ;;  %v3816_v21 = vld [vmem:[%s4267_s5 + $0x58] sm:$0xff]  ;;  %v3829_v60 = vld [vmem:[%s4267_s5 + $0x30] sm:$0xff]  ;;  %v3835_v52 = vld [vmem:[%s4267_s5 + $0x40] sm:$0xff] }
 0x2df   :  { %2631 = vpow2.f32 %v2116_v0  ;;  %v2117_v61 = vmul.f32 -1.442695, %v1010_v41  ;;  %v3822_v0 = vld [vmem:[%s4267_s5 + $0x38] sm:$0xff]  ;;  %v3841_v41 = vld [vmem:[%s4267_s5 + $0x20] sm:$0xff] }
 0x2e0   :  { %4387 = vst [vmem:[#allocation19_spill] sm:$0xff] %v3841_v41 }
 0x2e1   :  { %2633 = vpow2.f32 %v2117_v61  ;;  %v3848_v61 = vld [vmem:[%s4267_s5 + $0x18] sm:$0xff] }
 0x2e2   :  { %4388 = vst [vmem:[#allocation8_spill] sm:$0xff] %v3848_v61 }
 0x2ec   :  { %v2632_v62 = vpop.eup %2631 }
 0x2ed   :  { %v1004_v36 = vadd.f32 1.0, %v2632_v62  ;;  %v3854_v62 = vld [vmem:[%s4267_s5 + $0x28] sm:$0xff] }
 0x2ee   :  { %v2634_v49 = vpop.eup %2633  ;;  %4389 = vst [vmem:[#allocation9_spill] sm:$0xff] %v3854_v62 }
 0x2ef   :  { %2635 = vrcp.f32 %v1004_v36  ;;  %v1014_v32 = vadd.f32 1.0, %v2634_v49  ;;  %v3860_v36 = vld [vmem:[%s4267_s5 + $0x8] sm:$0xff]  ;;  %v3867_v49 = vld [vmem:[%s4267_s5] sm:$0xff] }
 0x2f0   :  { %4390 = vst [vmem:[#allocation22_spill] sm:$0xff] %v3860_v36  ;;  %4391 = vst [vmem:[#allocation10_spill] sm:$0xff] %v3867_v49 }
 0x2f1   :  { %2637 = vrcp.f32 %v1014_v32  ;;  %v3874_v32 = vld [vmem:[%s4267_s5 + $0x10] sm:$0xff] }
 0x2f2   :  { %4392 = vst [vmem:[#allocation11_spill] sm:$0xff] %v3874_v32 }
 0x2fc   :  { %v2636_v42 = vpop.eup %2635 }
 0x2fd   :  { %v1017_v56 = vmul.f32 %v2636_v42, %v997_v48 }
 0x2fe   :  { %v2638_v57 = vpop.eup %2637 }
 0x2ff   :  { %v1020_v30 = vadd.f32 %v1018_v29, %v1017_v56  ;;  %v1022_v47 = vsub.f32 1.0, %v2638_v57  ;;  %v1024_v54 = vmul.f32 %v2638_v57, %v3487_v58  ;;  %v3765_v58 = vld [vmem:[%s4267_s5 + $0xb8] sm:$0xff]  ;;  %v1029_v29 = vld [vmem:[#allocation2 + $0x12] sm:$0x3f] }
 0x301   :  { %2639 = vtanh.f32 %v1020_v30 }
 0x30e   :  { %v2640_v27 = vpop.eup %2639 }
 0x30f   :  { %v1023_v50 = vmul.f32 %v2640_v27, %v1022_v47 }
 0x311   :  { %v3681_v44 = vadd.f32 %v1024_v54, %v1023_v50  ;;  %v1179_v54 = vrot.slane %v1029_v29, 2 }
 0x313   :  { %2118 = vst [vmem:[%s4273_s11 + $0x4] sm:$0x3] %v3681_v44  ;;  %1095 = vmatmul.mubr.f32.vlgmr.msra.gmra.mxu0 %v3681_v44  ;;  %2451 = vmatmul.mubr.f32.vlgmr.msra.gmra.mxu1 %v3681_v44 }
 0x314   :  { %1202 = vmatpush1.msra.mxu0 %v3498_v1  ;;  %2454 = vmatpush3.msra.mxu1 %v3693_v39 }
 0x315   :  { %1203 = vmatprep.subr.mxu0 %v3505_v3  ;;  %2455 = vmatprep.subr.mxu1 %v4361_v51 }
 0x316   :  { %1204 = vmatpush1.msra.mxu0 %v3512_v5  ;;  %2456 = vmatpush3.msra.mxu1 %v3702_v24 }
 0x317   :  { %1205 = vmatprep.subr.mxu0 %v3519_v15  ;;  %2457 = vmatprep.subr.mxu1 %v4361_v51 }
 0x318   :  { %1206 = vmatpush1.msra.mxu0 %v3526_v8  ;;  %2458 = vmatpush3.msra.mxu1 %v3711_v26 }
 0x319   :  { %1207 = vmatprep.subr.mxu0 %v3533_v17  ;;  %2459 = vmatprep.subr.mxu1 %v4361_v51 }
 0x31a   :  { %1208 = vmatpush1.msra.mxu0 %v3540_v9  ;;  %2460 = vmatpush3.msra.mxu1 %v3720_v7 }
 0x31b   :  { %1209 = vmatprep.subr.mxu0 %v3547_v19  ;;  %2461 = vmatprep.subr.mxu1 %v4361_v51 }
 0x31c   :  { %1210 = vmatpush1.msra.mxu0 %v3554_v11  ;;  %2462 = vmatpush3.msra.mxu1 %v3729_v55 }
 0x31d   :  { %1211 = vmatprep.subr.mxu0 %v3561_v22  ;;  %2463 = vmatprep.subr.mxu1 %v4361_v51 }
 0x31e   :  { %1212 = vmatpush1.msra.mxu0 %v3568_v40  ;;  %2464 = vmatpush3.msra.mxu1 %v3738_v4 }
 0x31f   :  { %1213 = vmatprep.subr.mxu0 %v3575_v25  ;;  %2465 = vmatprep.subr.mxu1 %v4361_v51 }
 0x320   :  { %1214 = vmatpush1.msra.mxu0 %v3582_v23  ;;  %2466 = vmatpush3.msra.mxu1 %v3747_v37 }
 0x321   :  { %1215 = vmatprep.subr.mxu0 %v3589_v28  ;;  %2467 = vmatprep.subr.mxu1 %v4361_v51 }
 0x322   :  { %1216 = vmatpush1.msra.mxu0 %v3596_v38  ;;  %2468 = vmatpush3.msra.mxu1 %v3756_v53 }
 0x323   :  { %1217 = vmatprep.subr.mxu0 %v3603_v31  ;;  %2469 = vmatprep.subr.mxu1 %v4361_v51 }
 0x324   :  { %1218 = vmatpush1.msra.mxu0 %v3610_v59  ;;  %2470 = vmatpush3.msra.mxu1 %v3765_v58 }
 0x325   :  { %1219 = vmatprep.subr.mxu0 %v3617_v34  ;;  %2471 = vmatprep.subr.mxu1 %v4361_v51 }
 0x326   :  { %1220 = vmatpush1.msra.mxu0 %v3624_v33  ;;  %2472 = vmatpush3.msra.mxu1 %v3774_v12 }
 0x327   :  { %1221 = vmatprep.subr.mxu0 %v3631_v2  ;;  %2473 = vmatprep.subr.mxu1 %v4361_v51 }
 0x328   :  { %1222 = vmatpush1.msra.mxu0 %v3638_v45  ;;  %2474 = vmatpush3.msra.mxu1 %v3783_v13 }
 0x329   :  { %1223 = vmatprep.subr.mxu0 %v3645_v6  ;;  %2475 = vmatprep.subr.mxu1 %v4361_v51 }
 0x32a   :  { %1224 = vmatpush1.msra.mxu0 %v3791_v14  ;;  %2476 = vmatpush3.msra.mxu1 %v3797_v16 }
 0x32b   :  { %1225 = vmatprep.subr.mxu0 %v3803_v18  ;;  %2477 = vmatprep.subr.mxu1 %v4361_v51 }
 0x32c   :  { %1226 = vmatpush1.msra.mxu0 %v3810_v20  ;;  %2478 = vmatpush3.msra.mxu1 %v3816_v21 }
 0x32d   :  { %1227 = vmatprep.subr.mxu0 %v3822_v0  ;;  %2479 = vmatprep.subr.mxu1 %v4361_v51 }
 0x32e   :  { %1228 = vmatpush1.msra.mxu0 %v3829_v60  ;;  %2480 = vmatpush3.msra.mxu1 %v3835_v52 }
 0x32f   :  { %1229 = vmatprep.subr.mxu0 %v3841_v41  ;;  %2481 = vmatprep.subr.mxu1 %v4361_v51  ;;  %v1189_v41 = vrot.slane %v1029_v29, 4 }
 0x330   :  { %1230 = vmatpush1.msra.mxu0 %v3848_v61  ;;  %2482 = vmatpush3.msra.mxu1 %v3854_v62 }
 0x331   :  { %1231 = vmatprep.subr.mxu0 %v3860_v36  ;;  %2483 = vmatprep.subr.mxu1 %v4361_v51 }
 0x332   :  { %1232 = vmatpush1.msra.mxu0 %v3867_v49  ;;  %1265 = vmatprep.mubr.f32.mxu0 %v4361_v51 }
 0x333   :  { %2484 = vmatpush3.msra.mxu1 %v3874_v32  ;;  %2485 = vmatprep.mubr.msk.f32.mxu1 %vm2767_vm0, %v4361_v51 }
 0x334   :  { %1372 = vmatprep.subr.mxu0 %v3673_v10  ;;  %2488 = vmatprep.subr.mxu1 %v4361_v51 }
 0x3d3   :  { %v1096_v48 = vpop.f32.mrf.mxu0  ;;  %v1167_v42 = vpop.f32.mrf.mxu1 }
 0x3d4   :  { %v1097_v56 = vadd.f32 %v1096_v48, %v3397_v43  ;;  %v1168_v61 = vadd.f32 %v1167_v42, %v3405_v46 }
 0x3d5   :  { %v1098_v30 = vpop.f32.mrf.mxu0  ;;  %v2452_v57 = vpop.f32.mrf.mxu1 }
 0x3d6   :  { %v1171_v47 = vadd.f32 %v1097_v56, %v1029_v29  ;;  %v1099_v50 = vadd.f32 %v1098_v30, %v3401_v35  ;;  %v4400_v29 = vld [vmem:[#allocation30_spill] sm:$0xff] }
 0x3d8   :  { %v2119_v27 = vmul.f32 -1.442695, %v1171_v47  ;;  %v1181_v63 = vadd.f32 %v1179_v54, %v1099_v50  ;;  %v1200_v54 = vld [vmem:[#allocation2 + $0x18] sm:$0x3f] }
 0x3da   :  { %2641 = vpow2.f32 %v2119_v27  ;;  %v2120_v32 = vmul.f32 -1.442695, %v1181_v63 }
 0x3dc   :  { %2643 = vpow2.f32 %v2120_v32 }
 0x3e7   :  { %v2642_v49 = vpop.eup %2641 }
 0x3e8   :  { %v1175_v10 = vadd.f32 1.0, %v2642_v49 }
 0x3e9   :  { %v2644_v36 = vpop.eup %2643 }
 0x3ea   :  { %2645 = vrcp.f32 %v1175_v10  ;;  %v1185_v62 = vadd.f32 1.0, %v2644_v36  ;;  %v4394_v10 = vld [vmem:[#allocation8_spill] sm:$0xff]  ;;  %v4399_v36 = vld [vmem:[#allocation7_spill] sm:$0xff] }
 0x3ec   :  { %2647 = vrcp.f32 %v1185_v62  ;;  %v4398_v62 = vld [vmem:[#allocation11_spill] sm:$0xff] }
 0x3f7   :  { %v2646_v48 = vpop.eup %2645 }
 0x3f8   :  { %v1188_v43 = vmul.f32 %v2646_v48, %v1168_v61  ;;  %v4397_v61 = vld [vmem:[#allocation10_spill] sm:$0xff] }
 0x3f9   :  { %v2648_v57 = vpop.eup %2647 }
 0x3fa   :  { %v1191_v56 = vadd.f32 %v1189_v41, %v1188_v43  ;;  %v1193_v30 = vsub.f32 1.0, %v2648_v57  ;;  %v1195_v63 = vmul.f32 %v2648_v57, %v3681_v44  ;;  %v4393_v43 = vld [vmem:[#allocation19_spill] sm:$0xff]  ;;  %v4395_v44 = vld [vmem:[#allocation9_spill] sm:$0xff]  ;;  %v4396_v41 = vld [vmem:[#allocation22_spill] sm:$0xff] }
 0x3fc   :  { %2649 = vtanh.f32 %v1191_v56 }
 0x409   :  { %v2650_v47 = vpop.eup %2649 }
 0x40a   :  { %v1194_v27 = vmul.f32 %v2650_v47, %v1193_v30 }
 0x40c   :  { %v3885_v32 = vadd.f32 %v1195_v63, %v1194_v27  ;;  %v1350_v27 = vrot.slane %v1200_v54, 2 }
 0x40e   :  { %2121 = vst [vmem:[%s4273_s11 + $0x6] sm:$0x3] %v3885_v32  ;;  %1266 = vmatmul.mubr.f32.vlgmr.msra.gmra.mxu0 %v3885_v32  ;;  %2486 = vmatmul.mubr.f32.vlgmr.msra.gmra.mxu1 %v3885_v32 }
 0x40f   :  { %1373 = vmatpush1.msra.mxu0 %v3498_v1  ;;  %2489 = vmatpush3.msra.mxu1 %v3693_v39 }
 0x410   :  { %1374 = vmatprep.subr.mxu0 %v3505_v3  ;;  %2490 = vmatprep.subr.mxu1 %v4361_v51 }
 0x411   :  { %1375 = vmatpush1.msra.mxu0 %v3512_v5  ;;  %2491 = vmatpush3.msra.mxu1 %v3702_v24 }
 0x412   :  { %1376 = vmatprep.subr.mxu0 %v3519_v15  ;;  %2492 = vmatprep.subr.mxu1 %v4361_v51 }
 0x413   :  { %1377 = vmatpush1.msra.mxu0 %v3526_v8  ;;  %2493 = vmatpush3.msra.mxu1 %v3711_v26 }
 0x414   :  { %1378 = vmatprep.subr.mxu0 %v3533_v17  ;;  %2494 = vmatprep.subr.mxu1 %v4361_v51 }
 0x415   :  { %1379 = vmatpush1.msra.mxu0 %v3540_v9  ;;  %2495 = vmatpush3.msra.mxu1 %v3720_v7 }
 0x416   :  { %1380 = vmatprep.subr.mxu0 %v3547_v19  ;;  %2496 = vmatprep.subr.mxu1 %v4361_v51 }
 0x417   :  { %1381 = vmatpush1.msra.mxu0 %v3554_v11  ;;  %2497 = vmatpush3.msra.mxu1 %v3729_v55 }
 0x418   :  { %1382 = vmatprep.subr.mxu0 %v3561_v22  ;;  %2498 = vmatprep.subr.mxu1 %v4361_v51 }
 0x419   :  { %1383 = vmatpush1.msra.mxu0 %v3568_v40  ;;  %2499 = vmatpush3.msra.mxu1 %v3738_v4 }
 0x41a   :  { %1384 = vmatprep.subr.mxu0 %v3575_v25  ;;  %2500 = vmatprep.subr.mxu1 %v4361_v51 }
 0x41b   :  { %1385 = vmatpush1.msra.mxu0 %v3582_v23  ;;  %2501 = vmatpush3.msra.mxu1 %v3747_v37 }
 0x41c   :  { %1386 = vmatprep.subr.mxu0 %v3589_v28  ;;  %2502 = vmatprep.subr.mxu1 %v4361_v51 }
 0x41d   :  { %1387 = vmatpush1.msra.mxu0 %v3596_v38  ;;  %2503 = vmatpush3.msra.mxu1 %v3756_v53 }
 0x41e   :  { %1388 = vmatprep.subr.mxu0 %v3603_v31  ;;  %2504 = vmatprep.subr.mxu1 %v4361_v51 }
 0x41f   :  { %1389 = vmatpush1.msra.mxu0 %v3610_v59  ;;  %2505 = vmatpush3.msra.mxu1 %v3765_v58 }
 0x420   :  { %1390 = vmatprep.subr.mxu0 %v3617_v34  ;;  %2506 = vmatprep.subr.mxu1 %v4361_v51 }
 0x421   :  { %1391 = vmatpush1.msra.mxu0 %v3624_v33  ;;  %2507 = vmatpush3.msra.mxu1 %v3774_v12 }
 0x422   :  { %1392 = vmatprep.subr.mxu0 %v3631_v2  ;;  %2508 = vmatprep.subr.mxu1 %v4361_v51 }
 0x423   :  { %1393 = vmatpush1.msra.mxu0 %v3638_v45  ;;  %2509 = vmatpush3.msra.mxu1 %v3783_v13 }
 0x424   :  { %1394 = vmatprep.subr.mxu0 %v3645_v6  ;;  %2510 = vmatprep.subr.mxu1 %v4361_v51 }
 0x425   :  { %1395 = vmatpush1.msra.mxu0 %v3791_v14  ;;  %2511 = vmatpush3.msra.mxu1 %v3797_v16 }
 0x426   :  { %1396 = vmatprep.subr.mxu0 %v3803_v18  ;;  %2512 = vmatprep.subr.mxu1 %v4361_v51 }
 0x427   :  { %1397 = vmatpush1.msra.mxu0 %v3810_v20  ;;  %2513 = vmatpush3.msra.mxu1 %v3816_v21 }
 0x428   :  { %1398 = vmatprep.subr.mxu0 %v3822_v0  ;;  %2514 = vmatprep.subr.mxu1 %v4361_v51 }
 0x429   :  { %1399 = vmatpush1.msra.mxu0 %v3829_v60  ;;  %2515 = vmatpush3.msra.mxu1 %v3835_v52 }
 0x42a   :  { %1400 = vmatprep.subr.mxu0 %v4393_v43  ;;  %2516 = vmatprep.subr.mxu1 %v4361_v51  ;;  %v1360_v43 = vrot.slane %v1200_v54, 4 }
 0x42b   :  { %1401 = vmatpush1.msra.mxu0 %v4394_v10  ;;  %2517 = vmatpush3.msra.mxu1 %v4395_v44 }
 0x42c   :  { %1402 = vmatprep.subr.mxu0 %v4396_v41  ;;  %2518 = vmatprep.subr.mxu1 %v4361_v51 }
 0x42d   :  { %1403 = vmatpush1.msra.mxu0 %v4397_v61  ;;  %1436 = vmatprep.mubr.f32.mxu0 %v4361_v51 }
 0x42e   :  { %2519 = vmatpush3.msra.mxu1 %v4398_v62  ;;  %2520 = vmatprep.mubr.msk.f32.mxu1 %vm2767_vm0, %v4361_v51 }
 0x42f   :  { %1543 = vmatprep.subr.mxu0 %v4399_v36  ;;  %2523 = vmatprep.subr.mxu1 %v4361_v51 }
 0x4ce   :  { %v1267_v49 = vpop.f32.mrf.mxu0  ;;  %v1338_v42 = vpop.f32.mrf.mxu1 }
 0x4cf   :  { %v1268_v50 = vadd.f32 %v1267_v49, %v4400_v29  ;;  %v1339_v10 = vadd.f32 %v1338_v42, %v3405_v46 }
 0x4d0   :  { %v1269_v48 = vpop.f32.mrf.mxu0  ;;  %v2487_v56 = vpop.f32.mrf.mxu1 }
 0x4d1   :  { %v1342_v57 = vadd.f32 %v1268_v50, %v1200_v54  ;;  %v1270_v47 = vadd.f32 %v1269_v48, %v3401_v35  ;;  %v4408_v54 = vld [vmem:[#allocation30_spill] sm:$0xff] }
 0x4d3   :  { %v2122_v30 = vmul.f32 -1.442695, %v1342_v57  ;;  %v1352_v63 = vadd.f32 %v1350_v27, %v1270_v47 }
 0x4d5   :  { %2651 = vpow2.f32 %v2122_v30  ;;  %v2123_v62 = vmul.f32 -1.442695, %v1352_v63  ;;  %v1371_v63 = vld [vmem:[#allocation2 + $0x1e] sm:$0x3f] }
 0x4d7   :  { %2653 = vpow2.f32 %v2123_v62 }
 0x4e2   :  { %v2652_v61 = vpop.eup %2651 }
 0x4e3   :  { %v1346_v36 = vadd.f32 1.0, %v2652_v61  ;;  %v4406_v61 = vld [vmem:[#allocation11_spill] sm:$0xff] }
 0x4e4   :  { %v2654_v41 = vpop.eup %2653 }
 0x4e5   :  { %2655 = vrcp.f32 %v1346_v36  ;;  %v1356_v44 = vadd.f32 1.0, %v2654_v41  ;;  %v4405_v41 = vld [vmem:[#allocation10_spill] sm:$0xff]  ;;  %v4407_v36 = vld [vmem:[#allocation7_spill] sm:$0xff] }
 0x4e7   :  { %2657 = vrcp.f32 %v1356_v44  ;;  %v4404_v44 = vld [vmem:[#allocation22_spill] sm:$0xff] }
 0x4f2   :  { %v2656_v49 = vpop.eup %2655 }
 0x4f3   :  { %v1359_v29 = vmul.f32 %v2656_v49, %v1339_v10  ;;  %v4403_v10 = vld [vmem:[#allocation9_spill] sm:$0xff] }
 0x4f4   :  { %v2658_v56 = vpop.eup %2657 }
 0x4f5   :  { %v1362_v50 = vadd.f32 %v1360_v43, %v1359_v29  ;;  %v1364_v48 = vsub.f32 1.0, %v2658_v56  ;;  %v1366_v47 = vmul.f32 %v2658_v56, %v3885_v32  ;;  %v4401_v32 = vld [vmem:[#allocation19_spill] sm:$0xff]  ;;  %v4402_v43 = vld [vmem:[#allocation8_spill] sm:$0xff] }
 0x4f7   :  { %2659 = vtanh.f32 %v1362_v50 }
 0x504   :  { %v2660_v57 = vpop.eup %2659 }
 0x505   :  { %v1365_v30 = vmul.f32 %v2660_v57, %v1364_v48 }
 0x507   :  { %v3964_v62 = vadd.f32 %v1366_v47, %v1365_v30  ;;  %v1521_v30 = vrot.slane %v1371_v63, 2 }
 0x509   :  { %2124 = vst [vmem:[%s4273_s11 + $0x8] sm:$0x3] %v3964_v62  ;;  %1437 = vmatmul.mubr.f32.vlgmr.msra.gmra.mxu0 %v3964_v62  ;;  %2521 = vmatmul.mubr.f32.vlgmr.msra.gmra.mxu1 %v3964_v62 }
 0x50a   :  { %1544 = vmatpush1.msra.mxu0 %v3498_v1  ;;  %2524 = vmatpush3.msra.mxu1 %v3693_v39 }
 0x50b   :  { %1545 = vmatprep.subr.mxu0 %v3505_v3  ;;  %2525 = vmatprep.subr.mxu1 %v4361_v51 }
 0x50c   :  { %1546 = vmatpush1.msra.mxu0 %v3512_v5  ;;  %2526 = vmatpush3.msra.mxu1 %v3702_v24 }
 0x50d   :  { %1547 = vmatprep.subr.mxu0 %v3519_v15  ;;  %2527 = vmatprep.subr.mxu1 %v4361_v51 }
 0x50e   :  { %1548 = vmatpush1.msra.mxu0 %v3526_v8  ;;  %2528 = vmatpush3.msra.mxu1 %v3711_v26 }
 0x50f   :  { %1549 = vmatprep.subr.mxu0 %v3533_v17  ;;  %2529 = vmatprep.subr.mxu1 %v4361_v51 }
 0x510   :  { %1550 = vmatpush1.msra.mxu0 %v3540_v9  ;;  %2530 = vmatpush3.msra.mxu1 %v3720_v7 }
 0x511   :  { %1551 = vmatprep.subr.mxu0 %v3547_v19  ;;  %2531 = vmatprep.subr.mxu1 %v4361_v51 }
 0x512   :  { %1552 = vmatpush1.msra.mxu0 %v3554_v11  ;;  %2532 = vmatpush3.msra.mxu1 %v3729_v55 }
 0x513   :  { %1553 = vmatprep.subr.mxu0 %v3561_v22  ;;  %2533 = vmatprep.subr.mxu1 %v4361_v51 }
 0x514   :  { %1554 = vmatpush1.msra.mxu0 %v3568_v40  ;;  %2534 = vmatpush3.msra.mxu1 %v3738_v4 }
 0x515   :  { %1555 = vmatprep.subr.mxu0 %v3575_v25  ;;  %2535 = vmatprep.subr.mxu1 %v4361_v51 }
 0x516   :  { %1556 = vmatpush1.msra.mxu0 %v3582_v23  ;;  %2536 = vmatpush3.msra.mxu1 %v3747_v37 }
 0x517   :  { %1557 = vmatprep.subr.mxu0 %v3589_v28  ;;  %2537 = vmatprep.subr.mxu1 %v4361_v51 }
 0x518   :  { %1558 = vmatpush1.msra.mxu0 %v3596_v38  ;;  %2538 = vmatpush3.msra.mxu1 %v3756_v53 }
 0x519   :  { %1559 = vmatprep.subr.mxu0 %v3603_v31  ;;  %2539 = vmatprep.subr.mxu1 %v4361_v51 }
 0x51a   :  { %1560 = vmatpush1.msra.mxu0 %v3610_v59  ;;  %2540 = vmatpush3.msra.mxu1 %v3765_v58 }
 0x51b   :  { %1561 = vmatprep.subr.mxu0 %v3617_v34  ;;  %2541 = vmatprep.subr.mxu1 %v4361_v51 }
 0x51c   :  { %1562 = vmatpush1.msra.mxu0 %v3624_v33  ;;  %2542 = vmatpush3.msra.mxu1 %v3774_v12 }
 0x51d   :  { %1563 = vmatprep.subr.mxu0 %v3631_v2  ;;  %2543 = vmatprep.subr.mxu1 %v4361_v51 }
 0x51e   :  { %1564 = vmatpush1.msra.mxu0 %v3638_v45  ;;  %2544 = vmatpush3.msra.mxu1 %v3783_v13 }
 0x51f   :  { %1565 = vmatprep.subr.mxu0 %v3645_v6  ;;  %2545 = vmatprep.subr.mxu1 %v4361_v51 }
 0x520   :  { %1566 = vmatpush1.msra.mxu0 %v3791_v14  ;;  %2546 = vmatpush3.msra.mxu1 %v3797_v16 }
 0x521   :  { %1567 = vmatprep.subr.mxu0 %v3803_v18  ;;  %2547 = vmatprep.subr.mxu1 %v4361_v51 }
 0x522   :  { %1568 = vmatpush1.msra.mxu0 %v3810_v20  ;;  %2548 = vmatpush3.msra.mxu1 %v3816_v21 }
 0x523   :  { %1569 = vmatprep.subr.mxu0 %v3822_v0  ;;  %2549 = vmatprep.subr.mxu1 %v4361_v51 }
 0x524   :  { %1570 = vmatpush1.msra.mxu0 %v3829_v60  ;;  %2550 = vmatpush3.msra.mxu1 %v3835_v52 }
 0x525   :  { %1571 = vmatprep.subr.mxu0 %v4401_v32  ;;  %2551 = vmatprep.subr.mxu1 %v4361_v51  ;;  %v1531_v32 = vrot.slane %v1371_v63, 4 }
 0x526   :  { %1572 = vmatpush1.msra.mxu0 %v4402_v43  ;;  %2552 = vmatpush3.msra.mxu1 %v4403_v10 }
 0x527   :  { %1573 = vmatprep.subr.mxu0 %v4404_v44  ;;  %2553 = vmatprep.subr.mxu1 %v4361_v51 }
 0x528   :  { %1574 = vmatpush1.msra.mxu0 %v4405_v41  ;;  %1607 = vmatprep.mubr.f32.mxu0 %v4361_v51 }
 0x529   :  { %2554 = vmatpush3.msra.mxu1 %v4406_v61  ;;  %2555 = vmatprep.mubr.msk.f32.mxu1 %vm2767_vm0, %v4361_v51 }
 0x52a   :  { %1714 = vmatprep.subr.mxu0 %v4407_v36  ;;  %2558 = vmatprep.subr.mxu1 %v4361_v51 }
 0x5c9   :  { %v1438_v42 = vpop.f32.mrf.mxu0  ;;  %v1509_v29 = vpop.f32.mrf.mxu1 }
 0x5ca   :  { %v1439_v27 = vadd.f32 %v1438_v42, %v4408_v54  ;;  %v1510_v43 = vadd.f32 %v1509_v29, %v3405_v46  ;;  %v1908_v29 = vld [vmem:[%s4269_s7 + $0xc8] sm:$0xff] }
 0x5cb   :  { %v1440_v49 = vpop.f32.mrf.mxu0  ;;  %v2522_v50 = vpop.f32.mrf.mxu1 }
 0x5cc   :  { %v1513_v56 = vadd.f32 %v1439_v27, %v1371_v63  ;;  %v1441_v57 = vadd.f32 %v1440_v49, %v3401_v35  ;;  %v1907_v63 = vld [vmem:[%s4269_s7 + $0xc0] sm:$0xff] }
 0x5ce   :  { %v2125_v48 = vmul.f32 -1.442695, %v1513_v56  ;;  %v1523_v47 = vadd.f32 %v1521_v30, %v1441_v57  ;;  %v1891_v30 = vld [vmem:[%s4269_s7 + $0x40] sm:$0xff] }
 0x5d0   :  { %2661 = vpow2.f32 %v2125_v48  ;;  %v2126_v61 = vmul.f32 -1.442695, %v1523_v47  ;;  %v1906_v47 = vld [vmem:[%s4269_s7 + $0xb8] sm:$0xff] }
 0x5d2   :  { %2663 = vpow2.f32 %v2126_v61 }
 0x5dd   :  { %v2662_v41 = vpop.eup %2661 }
 0x5de   :  { %v1517_v36 = vadd.f32 1.0, %v2662_v41  ;;  %v1893_v41 = vld [vmem:[%s4269_s7 + $0x50] sm:$0xff] }
 0x5df   :  { %v2664_v44 = vpop.eup %2663 }
 0x5e0   :  { %2665 = vrcp.f32 %v1517_v36  ;;  %v1527_v10 = vadd.f32 1.0, %v2664_v44  ;;  %v1909_v44 = vld [vmem:[%s4269_s7 + $0xd0] sm:$0xff]  ;;  %v1890_v36 = vld [vmem:[%s4269_s7 + $0x38] sm:$0xff] }
 0x5e2   :  { %2667 = vrcp.f32 %v1527_v10  ;;  %v1894_v10 = vld [vmem:[%s4269_s7 + $0x58] sm:$0xff] }
 0x5ed   :  { %v2666_v42 = vpop.eup %2665 }
 0x5ee   :  { %v1530_v54 = vmul.f32 %v2666_v42, %v1510_v43  ;;  %v1910_v43 = vld [vmem:[%s4269_s7 + $0xd8] sm:$0xff]  ;;  %v1905_v42 = vld [vmem:[%s4269_s7 + $0xb0] sm:$0xff] }
 0x5ef   :  { %v2668_v50 = vpop.eup %2667 }
 0x5f0   :  { %v1533_v27 = vadd.f32 %v1531_v32, %v1530_v54  ;;  %v1535_v49 = vsub.f32 1.0, %v2668_v50  ;;  %v1537_v57 = vmul.f32 %v2668_v50, %v3964_v62  ;;  %v1911_v62 = vld [vmem:[%s4269_s7 + $0xe0] sm:$0xff]  ;;  %v1892_v54 = vld [vmem:[%s4269_s7 + $0x48] sm:$0xff] }
 0x5f1   :  { %v1895_v32 = vld [vmem:[%s4269_s7 + $0x60] sm:$0xff]  ;;  %v1904_v50 = vld [vmem:[%s4269_s7 + $0xa8] sm:$0xff] }
 0x5f2   :  { %2669 = vtanh.f32 %v1533_v27  ;;  %v1889_v27 = vld [vmem:[%s4269_s7 + $0x30] sm:$0xff] }
 0x5ff   :  { %v2670_v56 = vpop.eup %2669 }
 0x600   :  { %v1536_v48 = vmul.f32 %v2670_v56, %v1535_v49  ;;  %v1888_v49 = vld [vmem:[%s4269_s7 + $0x28] sm:$0xff]  ;;  %v1903_v56 = vld [vmem:[%s4269_s7 + $0xa0] sm:$0xff] }
 0x602   :  { %v4043_v61 = vadd.f32 %v1537_v57, %v1536_v48  ;;  %v1887_v48 = vld [vmem:[%s4269_s7 + $0x20] sm:$0xff]  ;;  %v1902_v57 = vld [vmem:[%s4269_s7 + $0x98] sm:$0xff] }
 0x604   :  { %2127 = vst [vmem:[%s4273_s11 + $0xa] sm:$0x3] %v4043_v61  ;;  %1608 = vmatmul.mubr.f32.vlgmr.msra.gmra.mxu0 %v4043_v61  ;;  %2556 = vmatmul.mubr.f32.vlgmr.msra.gmra.mxu1 %v4043_v61 }
 0x605   :  { %1715 = vmatpush1.msra.mxu0 %v3498_v1  ;;  %2559 = vmatpush3.msra.mxu1 %v3693_v39  ;;  %v4409_v1 = vld [vmem:[#allocation19_spill] sm:$0xff] }
 0x606   :  { %1716 = vmatprep.subr.mxu0 %v3505_v3  ;;  %2560 = vmatprep.subr.mxu1 %v4361_v51  ;;  %v4410_v3 = vld [vmem:[#allocation8_spill] sm:$0xff] }
 0x607   :  { %1717 = vmatpush1.msra.mxu0 %v3512_v5  ;;  %2561 = vmatpush3.msra.mxu1 %v3702_v24  ;;  %v4411_v5 = vld [vmem:[#allocation9_spill] sm:$0xff] }
 0x608   :  { %1718 = vmatprep.subr.mxu0 %v3519_v15  ;;  %2562 = vmatprep.subr.mxu1 %v4361_v51  ;;  %v4412_v15 = vld [vmem:[#allocation22_spill] sm:$0xff] }
 0x609   :  { %1719 = vmatpush1.msra.mxu0 %v3526_v8  ;;  %2563 = vmatpush3.msra.mxu1 %v3711_v26  ;;  %v4413_v8 = vld [vmem:[#allocation10_spill] sm:$0xff] }
 0x60a   :  { %1720 = vmatprep.subr.mxu0 %v3533_v17  ;;  %2564 = vmatprep.subr.mxu1 %v4361_v51  ;;  %v4414_v17 = vld [vmem:[#allocation11_spill] sm:$0xff] }
 0x60b   :  { %1721 = vmatpush1.msra.mxu0 %v3540_v9  ;;  %2565 = vmatpush3.msra.mxu1 %v3720_v7 }
 0x60c   :  { %1722 = vmatprep.subr.mxu0 %v3547_v19  ;;  %2566 = vmatprep.subr.mxu1 %v4361_v51 }
 0x60d   :  { %1723 = vmatpush1.msra.mxu0 %v3554_v11  ;;  %2567 = vmatpush3.msra.mxu1 %v3729_v55  ;;  %v4415_v11 = vld [vmem:[#allocation30_spill] sm:$0xff] }
 0x60e   :  { %1724 = vmatprep.subr.mxu0 %v3561_v22  ;;  %2568 = vmatprep.subr.mxu1 %v4361_v51 }
 0x60f   :  { %1725 = vmatpush1.msra.mxu0 %v3568_v40  ;;  %2569 = vmatpush3.msra.mxu1 %v3738_v4  ;;  %v1542_v40 = vld [vmem:[#allocation2 + $0x24] sm:$0x3f] }
 0x610   :  { %1726 = vmatprep.subr.mxu0 %v3575_v25  ;;  %2570 = vmatprep.subr.mxu1 %v4361_v51  ;;  %v1702_v55 = vrot.slane %v1542_v40, 4 }
 0x611   :  { %1727 = vmatpush1.msra.mxu0 %v3582_v23  ;;  %2571 = vmatpush3.msra.mxu1 %v3747_v37 }
 0x612   :  { %1728 = vmatprep.subr.mxu0 %v3589_v28  ;;  %2572 = vmatprep.subr.mxu1 %v4361_v51 }
 0x613   :  { %1729 = vmatpush1.msra.mxu0 %v3596_v38  ;;  %2573 = vmatpush3.msra.mxu1 %v3756_v53 }
 0x614   :  { %1730 = vmatprep.subr.mxu0 %v3603_v31  ;;  %2574 = vmatprep.subr.mxu1 %v4361_v51 }
 0x615   :  { %1731 = vmatpush1.msra.mxu0 %v3610_v59  ;;  %2575 = vmatpush3.msra.mxu1 %v3765_v58  ;;  %v1692_v59 = vrot.slane %v1542_v40, 2 }
 0x616   :  { %1732 = vmatprep.subr.mxu0 %v3617_v34  ;;  %2576 = vmatprep.subr.mxu1 %v4361_v51 }
 0x617   :  { %1733 = vmatpush1.msra.mxu0 %v3624_v33  ;;  %2577 = vmatpush3.msra.mxu1 %v3774_v12 }
 0x618   :  { %1734 = vmatprep.subr.mxu0 %v3631_v2  ;;  %2578 = vmatprep.subr.mxu1 %v4361_v51 }
 0x619   :  { %1735 = vmatpush1.msra.mxu0 %v3638_v45  ;;  %2579 = vmatpush3.msra.mxu1 %v3783_v13 }
 0x61a   :  { %1736 = vmatprep.subr.mxu0 %v3645_v6  ;;  %2580 = vmatprep.subr.mxu1 %v4361_v51 }
 0x61b   :  { %1737 = vmatpush1.msra.mxu0 %v3791_v14  ;;  %2581 = vmatpush3.msra.mxu1 %v3797_v16  ;;  %v4416_v16 = vld [vmem:[#allocation31_spill] sm:$0xff] }
 0x61c   :  { %1738 = vmatprep.subr.mxu0 %v3803_v18  ;;  %2582 = vmatprep.subr.mxu1 %v4361_v51  ;;  %v1914_v18 = vld [vmem:[%s4269_s7 + $0xf8] sm:$0xff] }
 0x61d   :  { %1739 = vmatpush1.msra.mxu0 %v3810_v20  ;;  %2583 = vmatpush3.msra.mxu1 %v3816_v21  ;;  %v1898_v20 = vld [vmem:[%s4269_s7 + $0x78] sm:$0xff]  ;;  %v1913_v21 = vld [vmem:[%s4269_s7 + $0xf0] sm:$0xff] }
 0x61e   :  { %1740 = vmatprep.subr.mxu0 %v3822_v0  ;;  %2584 = vmatprep.subr.mxu1 %v4361_v51  ;;  %v1897_v0 = vld [vmem:[%s4269_s7 + $0x70] sm:$0xff] }
 0x61f   :  { %1741 = vmatpush1.msra.mxu0 %v3829_v60  ;;  %2585 = vmatpush3.msra.mxu1 %v3835_v52  ;;  %v1912_v60 = vld [vmem:[%s4269_s7 + $0xe8] sm:$0xff] }
 0x620   :  { %1742 = vmatprep.subr.mxu0 %v4409_v1  ;;  %2586 = vmatprep.subr.mxu1 %v4361_v51  ;;  %v1896_v52 = vld [vmem:[%s4269_s7 + $0x68] sm:$0xff]  ;;  %v1901_v1 = vld [vmem:[%s4269_s7 + $0x90] sm:$0xff] }
 0x621   :  { %1743 = vmatpush1.msra.mxu0 %v4410_v3  ;;  %2587 = vmatpush3.msra.mxu1 %v4411_v5  ;;  %v1885_v3 = vld [vmem:[%s4269_s7 + $0x10] sm:$0xff]  ;;  %v1900_v5 = vld [vmem:[%s4269_s7 + $0x88] sm:$0xff] }
 0x622   :  { %1744 = vmatprep.subr.mxu0 %v4412_v15  ;;  %2588 = vmatprep.subr.mxu1 %v4361_v51  ;;  %v1884_v15 = vld [vmem:[%s4269_s7 + $0x8] sm:$0xff] }
 0x623   :  { %1745 = vmatpush1.msra.mxu0 %v4413_v8  ;;  %1778 = vmatprep.mubr.f32.mxu0 %v4361_v51  ;;  %v1899_v8 = vld [vmem:[%s4269_s7 + $0x80] sm:$0xff] }
 0x624   :  { %2589 = vmatpush3.msra.mxu1 %v4414_v17  ;;  %2590 = vmatprep.mubr.msk.f32.mxu1 %vm2767_vm0, %v4361_v51  ;;  %v1883_v17 = vld [vmem:[%s4269_s7] sm:$0xff] }
 0x625   :  { %2593 = vmatprep.subr.mxu1 %v4361_v51  ;;  %2273 = vmatprep.subr.mxu0 %v1914_v18 }
 0x6c4   :  { %v1609_v9 = vpop.f32.mrf.mxu0  ;;  %v1680_v19 = vpop.f32.mrf.mxu1 }
 0x6c5   :  { %v1610_v22 = vadd.f32 %v1609_v9, %v4415_v11  ;;  %v1681_v24 = vadd.f32 %v1680_v19, %v3405_v46 }
 0x6c6   :  { %v1611_v25 = vpop.f32.mrf.mxu0  ;;  %v2557_v23 = vpop.f32.mrf.mxu1 }
 0x6c7   :  { %v1684_v28 = vadd.f32 %v1610_v22, %v1542_v40  ;;  %v1612_v31 = vadd.f32 %v1611_v25, %v3401_v35  ;;  %v1713_v40 = vld [vmem:[#allocation2 + $0x2a] sm:$0x3f] }
 0x6c9   :  { %v2128_v38 = vmul.f32 -1.442695, %v1684_v28  ;;  %v1694_v34 = vadd.f32 %v1692_v59, %v1612_v31  ;;  %v1863_v59 = vrot.slane %v1713_v40, 2 }
 0x6cb   :  { %2671 = vpow2.f32 %v2128_v38  ;;  %v2129_v33 = vmul.f32 -1.442695, %v1694_v34 }
 0x6cd   :  { %2673 = vpow2.f32 %v2129_v33 }
 0x6d8   :  { %v2672_v2 = vpop.eup %2671 }
 0x6d9   :  { %v1688_v45 = vadd.f32 1.0, %v2672_v2 }
 0x6da   :  { %v2674_v6 = vpop.eup %2673 }
 0x6db   :  { %2675 = vrcp.f32 %v1688_v45  ;;  %v1698_v39 = vadd.f32 1.0, %v2674_v6 }
 0x6dd   :  { %2677 = vrcp.f32 %v1698_v39 }
 0x6e8   :  { %v2676_v26 = vpop.eup %2675 }
 0x6e9   :  { %v1701_v7 = vmul.f32 %v2676_v26, %v1681_v24 }
 0x6ea   :  { %v2678_v37 = vpop.eup %2677 }
 0x6eb   :  { %v1704_v4 = vadd.f32 %v1702_v55, %v1701_v7  ;;  %v1706_v53 = vsub.f32 1.0, %v2678_v37  ;;  %v1708_v13 = vmul.f32 %v2678_v37, %v4043_v61  ;;  %v1886_v61 = vld [vmem:[%s4269_s7 + $0x18] sm:$0xff]  ;;  %v1873_v7 = vrot.slane %v1713_v40, 4 }
 0x6ed   :  { %2679 = vtanh.f32 %v1704_v4 }
 0x6fa   :  { %v2680_v58 = vpop.eup %2679 }
 0x6fb   :  { %v1707_v12 = vmul.f32 %v2680_v58, %v1706_v53 }
 0x6fd   :  { %v4121_v14 = vadd.f32 %v1708_v13, %v1707_v12  ;;  %v1995_v13 = vld [vmem:[%s4271_s9 + $0x10] sm:$0xff] }
 0x6ff   :  { %2130 = vst [vmem:[%s4273_s11 + $0xc] sm:$0x3] %v4121_v14  ;;  %1779 = vmatmul.mubr.f32.vlgmr.msra.gmra.mxu0 %v4121_v14  ;;  %2591 = vmatmul.mubr.f32.vlgmr.msra.gmra.mxu1 %v4121_v14 }
 0x700   :  { %1986 = vmatprep.mubr.f32.mxu0 %v4416_v16  ;;  %2601 = vmatprep.mubr.msk.f32.mxu1 %vm2767_vm0, %v4361_v51  ;;  %v1993_v16 = vld [vmem:[%s4271_s9] sm:$0xff] }
 0x701   :  { %2274 = vmatpush3.msra.mxu0 %v1898_v20  ;;  %v2134_v20 = vld [vmem:[%s4270_s8] ss:$0 sm:$0xff]  ;;  %s2769_s8 = smov [#allocation3]  }
 0x702   :  { %2275 = vmatprep.subr.mxu0 %v1913_v21 }
 0x703   :  { %2276 = vmatpush3.msra.mxu0 %v1897_v0 }
 0x704   :  { %2277 = vmatprep.subr.mxu0 %v1912_v60 }
 0x705   :  { %2278 = vmatpush3.msra.mxu0 %v1896_v52 }
 0x706   :  { %2279 = vmatprep.subr.mxu0 %v1911_v62 }
 0x707   :  { %2280 = vmatpush3.msra.mxu0 %v1895_v32 }
 0x708   :  { %2281 = vmatprep.subr.mxu0 %v1910_v43 }
 0x709   :  { %2282 = vmatpush3.msra.mxu0 %v1894_v10 }
 0x70a   :  { %2283 = vmatprep.subr.mxu0 %v1909_v44 }
 0x70b   :  { %2284 = vmatpush3.msra.mxu0 %v1893_v41 }
 0x70c   :  { %2285 = vmatprep.subr.mxu0 %v1908_v29 }
 0x70d   :  { %2286 = vmatpush3.msra.mxu0 %v1892_v54 }
 0x70e   :  { %2287 = vmatprep.subr.mxu0 %v1907_v63 }
 0x70f   :  { %2288 = vmatpush3.msra.mxu0 %v1891_v30 }
 0x710   :  { %2289 = vmatprep.subr.mxu0 %v1906_v47 }
 0x711   :  { %2290 = vmatpush3.msra.mxu0 %v1890_v36 }
 0x712   :  { %2291 = vmatprep.subr.mxu0 %v1905_v42 }
 0x713   :  { %2292 = vmatpush3.msra.mxu0 %v1889_v27 }
 0x714   :  { %2293 = vmatprep.subr.mxu0 %v1904_v50 }
 0x715   :  { %2294 = vmatpush3.msra.mxu0 %v1888_v49 }
 0x716   :  { %2295 = vmatprep.subr.mxu0 %v1903_v56 }
 0x717   :  { %2296 = vmatpush3.msra.mxu0 %v1887_v48 }
 0x718   :  { %2297 = vmatprep.subr.mxu0 %v1902_v57 }
 0x719   :  { %2298 = vmatpush3.msra.mxu0 %v1886_v61 }
 0x71a   :  { %2299 = vmatprep.subr.mxu0 %v1901_v1 }
 0x71b   :  { %2300 = vmatpush3.msra.mxu0 %v1885_v3 }
 0x71c   :  { %2301 = vmatprep.subr.mxu0 %v1900_v5 }
 0x71d   :  { %2302 = vmatpush3.msra.mxu0 %v1884_v15 }
 0x71e   :  { %2303 = vmatprep.subr.mxu0 %v1899_v8 }
 0x71f   :  { %2304 = vmatpush3.msra.mxu0 %v1883_v17 }
 0x7bf   :  { %v1780_v9 = vpop.f32.mrf.mxu0  ;;  %v1851_v19 = vpop.f32.mrf.mxu1 }
 0x7c0   :  { %v1781_v22 = vadd.f32 %v1780_v9, %v4415_v11  ;;  %v1852_v24 = vadd.f32 %v1851_v19, %v3405_v46  ;;  %v1996_v46 = vld [vmem:[%s4271_s9 + $0x18] sm:$0xff] }
 0x7c1   :  { %v1782_v25 = vpop.f32.mrf.mxu0  ;;  %v2592_v23 = vpop.f32.mrf.mxu1  ;;  %2594 = vmatpush3.msra.mxu1 %v1996_v46 }
 0x7c2   :  { %v1855_v28 = vadd.f32 %v1781_v22, %v1713_v40  ;;  %v1783_v31 = vadd.f32 %v1782_v25, %v3401_v35  ;;  %2595 = vmatprep.subr.mxu1 %v4361_v51 }
 0x7c3   :  { %2596 = vmatpush3.msra.mxu1 %v1995_v13 }
 0x7c4   :  { %v2131_v38 = vmul.f32 -1.442695, %v1855_v28  ;;  %v1865_v34 = vadd.f32 %v1863_v59, %v1783_v31  ;;  %2597 = vmatprep.subr.mxu1 %v4361_v51 }
 0x7c6   :  { %2681 = vpow2.f32 %v2131_v38  ;;  %v2132_v33 = vmul.f32 -1.442695, %v1865_v34 }
 0x7c8   :  { %2683 = vpow2.f32 %v2132_v33 }
 0x7d3   :  { %v2682_v2 = vpop.eup %2681 }
 0x7d4   :  { %v1859_v45 = vadd.f32 1.0, %v2682_v2 }
 0x7d5   :  { %v2684_v6 = vpop.eup %2683 }
 0x7d6   :  { %2685 = vrcp.f32 %v1859_v45  ;;  %v1869_v39 = vadd.f32 1.0, %v2684_v6 }
 0x7d8   :  { %2687 = vrcp.f32 %v1869_v39 }
 0x7e3   :  { %v2686_v11 = vpop.eup %2685 }
 0x7e4   :  { %v1872_v26 = vmul.f32 %v2686_v11, %v1852_v24 }
 0x7e5   :  { %v2688_v4 = vpop.eup %2687 }
 0x7e6   :  { %v1875_v55 = vadd.f32 %v1873_v7, %v1872_v26  ;;  %v1877_v35 = vsub.f32 1.0, %v2688_v4  ;;  %v1879_v58 = vmul.f32 %v2688_v4, %v4121_v14  ;;  %v1994_v14 = vld [vmem:[%s4271_s9 + $0x8] sm:$0xff]  ;;  %s2101_s9 = sshll.u32 %s2769_s8, 4  ;;  %s2102_s9 = int_to_ptr.vmem [resolvable:$true] %s2101_s9 }
 0x7e7   :  { %2598 = vmatpush3.msra.mxu1 %v1994_v14  ;;  %p2748_p1 = scmp.lt.s32.totalorder %s2102_s9, %s2102_s9 }
 0x7e8   :  { %2689 = vtanh.f32 %v1875_v55  ;;  %2599 = vmatprep.subr.mxu1 %v4361_v51  ;;  %v2135_v51 = vld [vmem:[%s4272_s10] ss:$0 sm:$0xff]  ;;  %s2743_s10 = scalar_lea.vmem %s2102_s9, 32 }
 0x7e9   :  { %2600 = vmatpush3.msra.mxu1 %v1993_v16  ;;  %p2744_p0 = scmp.ne.s32.totalorder %s2102_s9, %s2743_s10  ;;  %p2749_p2 = scmp.lt.s32.totalorder %s2743_s10, %s2743_s10 }
 0x7eb   :  { %p2750_p3 = por %p2749_p2, %p2748_p1 }
 0x7ed   :  { %p2751_p4 = pnand %p2750_p3, %p2744_p0 }
 0x7f5   :  { %v2690_v37 = vpop.eup %2689 }
 0x7f6   :  { %v1878_v53 = vmul.f32 %v2690_v37, %v1877_v35 }
 0x7f8   :  { %v1880_v12 = vadd.f32 %v1879_v58, %v1878_v53 }
 0x7fa   :  { %2133 = vst [vmem:[%s4273_s11 + $0xe] sm:$0x3] %v1880_v12  ;;  %1987 = vmatmul.mubr.f32.vlgmr.msra.gmra.mxu0 %v1880_v12 }
 0x8ba   :  { %v2305_v18 = vpop.f32.mrf.mxu0 }
 0x8bc   :  { %v2306_v21 = vpop.f32.mrf.mxu0 }
 0x8bd   :  { %v2307_v0 = vadd.f32 %v2306_v21, %v2305_v18 }
 0x8bf   :  { %v1989_v60 = vadd.f32 %v2307_v0, %v2134_v20 }
 0x8c1   :  { %v1992_v52 = vmax.f32 %v1989_v60, 0.0 }
 0x8c3   :  { %2602 = vmatmul.mubr.msk.f32.vlgmr.msra.gmra.mxu1 %vm2004_vm1, %v1992_v52 }
 0x983   :  { %v2074_v62 = vpop.f32.mrf.mxu1 }
 0x984   :  { %v2075_v32 = vadd.f32 %v2135_v51, %v2074_v62 }
 0x985   :  { %v2603_v43 = vpop.f32.mrf.mxu1 }
 0x986   :  { %v2078_v10 = vmax.f32 %v2075_v32, 0.0 }
 0x988   :  { %v2080_v44 = vsel %vm2079_vm2, %v2078_v10, -inf }
 0x989   :  { %2081 = vmax.xlane.f32.xlu0 %v2080_v44 }
 0xa12   :  { %v2082_v41 = vpop.xlane.xlu0 %2081 }
 0xa13   :  { %v2083_v29 = vsub.f32 %v2078_v10, %v2082_v41 }
 0xa15   :  { %v2084_v54 = vmul.f32 1.442695, %v2083_v29 }
 0xa17   :  { %2691 = vpow2.f32 %v2084_v54 }
 0xa24   :  { %v2692_v63 = vpop.eup %2691 }
 0xa25   :  { %v2086_v30 = vsel %vm2079_vm2, %v2692_v63, 0.0 }
 0xa26   :  { %2087 = vadd.xlane.f32.xlu1 %v2086_v30 }
 0xaaf   :  { %v2088_v47 = vpop.xlane.xlu1 %2087 }
 0xab0   :  { %2693 = vlog2.f32 %v2088_v47 }
 0xabd   :  { %v2694_v36 = vpop.eup %2693 }
 0xabe   :  { %v2090_v42 = vmul.f32 0.6931472, %v2694_v36 }
 0xac0   :  { %v2091_v27 = vsub.f32 %v2083_v29, %v2090_v42 }
 0xac2   :  { %2092 = vst.msk [vmem:[#allocation3] sm:$0x3] %vm2079_vm2, %v2091_v27 }
 0xac3   :  { %2754 = shalt.err (!%p2751_p4)
}
 0xac4   :  { %2104 = dma.vmem_to_hbm [thread:$0]  %s2102_s9, 32, %s4274_s12, [#allocation4]  }
 0xac5   :  { %2763 = dma.done.wait [#allocation4], 32  }
 0xac6   :  { %2764 = vsyncadd [#allocation4], 4294967264 }
 0xac7   :  { %2110 = vsyncpa [#allocation4], 1 }

</bundles_post_ra>
